<compile_context>
chip_gen: v7x
topology: tpu7x:2x2x1
jax: 0.10.0
libtpu: 0.0.40
codegen_flags: <defaults>
</compile_context>

<pallas_src>
import functools

import jax
import jax.numpy as jnp
from jax.experimental import pallas as pl
from jax.experimental.pallas import tpu as pltpu


def _round_up(a: int, b: int) -> int:
    return (a + b - 1) // b * b


def _cdiv(a: int, b: int) -> int:
    return (a + b - 1) // b


def _vmem_budget_bytes() -> int:
    """Usable VMEM: physical capacity minus ~1/8 headroom for compiler scratch."""
    cap = 64 * 1024 * 1024  # conservative fallback = v7x per-TensorCore VMEM
    try:
        info = pltpu.get_tpu_info()
        cap = int(getattr(info, "vmem_capacity_bytes", cap)) or cap
    except Exception:
        pass
    return cap - max(cap // 8, 8 * 1024 * 1024)   # 64MiB->56MiB, 128MiB->112MiB


def _vmem_estimate(tm: int, th: int, dim: int, mm_bytes: int, out_bytes: int) -> int:
    """Rough per-step VMEM footprint (streamed tiles double-buffered)."""
    est = 2 * tm * dim * mm_bytes             # x tile
    est += 2 * dim * (2 * th) * mm_bytes      # packed [W1|W3] tile
    est += 2 * (2 * th) * mm_bytes            # packed [b1|b3]
    est += 2 * th * dim * mm_bytes            # W2 tile
    est += 2 * dim * mm_bytes                 # b2 (tiny)
    est += 2 * tm * dim * out_bytes           # output tile
    est += tm * dim * 4                       # f32 accumulator scratch
    est += 3 * tm * (2 * th) * 4              # f32 intermediates (h13, gate) headroom
    return est


def _ffn_kernel(x_ref, w13_ref, b13_ref, w2_ref, b2_ref, o_ref, acc_ref, *, th, nk):
    """One (M-tile, H-tile) grid step of the SwiGLU FFN."""
    k = pl.program_id(1)

    xm = x_ref[...]                                            # (TM, D), weight dtype
    # One wide up-projection for both gates:
    #   [h1 | h3] = x @ [W1_k | W3_k] + [b1_k | b3_k]
    h13 = jnp.dot(xm, w13_ref[...], preferred_element_type=jnp.float32)
    h13 = h13 + b13_ref[...].astype(jnp.float32)               # (TM, 2*TH) f32
    h1 = h13[:, :th]
    h3 = h13[:, th:]
    # SiLU + gate in f32 (sigmoid lands on EUP; multiplies on the VPU).
    h = (h1 * jax.nn.sigmoid(h1)) * h3                         # (TM, TH) f32

    # Partial down-projection for this H-tile.
    partial = jnp.dot(h.astype(w2_ref.dtype), w2_ref[...],
                      preferred_element_type=jnp.float32)      # (TM, D) f32

    if nk == 1:
        # Single reduction step: write the output directly (acc unused).
        o_ref[...] = (partial + b2_ref[...].astype(jnp.float32)).astype(o_ref.dtype)
    else:
        @pl.when(k == 0)
        def _first():
            acc_ref[...] = partial           # write-only init (no zero + RMW)

        @pl.when(jnp.logical_and(k > 0, k < nk - 1))
        def _middle():
            acc_ref[...] += partial

        @pl.when(k == nk - 1)
        def _last():                         # fused finalize: skip last acc RMW
            o_ref[...] = (acc_ref[...] + partial
                          + b2_ref[...].astype(jnp.float32)).astype(o_ref.dtype)


def feed_forward_pallas(x, w1, b1, w2, b2, w3, b3, *, tm=1024, th=512,
                        out_dtype=None):
    """SwiGLU FFN.  x: (..., dim).  Weights as (in, out); biases as (1, out)."""
    orig_shape = x.shape
    dim = orig_shape[-1]
    H = w1.shape[1]
    assert w1.shape == (dim, H) and w3.shape == (dim, H) and w2.shape == (H, dim)
    assert b1.shape == (1, H) and b3.shape == (1, H) and b2.shape == (1, dim)

    out_dtype = out_dtype or x.dtype
    mm_dtype = w1.dtype                     # MXU matmul dtype (bf16 recommended)
    mm_bytes = jnp.dtype(mm_dtype).itemsize
    out_bytes = jnp.dtype(out_dtype).itemsize
    # Sublane alignment for the M axis: 8 rows (f32), 16 (bf16), 32 (int8).
    row_align = max(8, 32 // mm_bytes)

    x2d = x.reshape(-1, dim)
    M = x2d.shape[0]
    # Cast ONCE at the call boundary, not per H-tile in the kernel.
    # (If x is f32 and weights are bf16, this is an intentional bf16 matmul.)
    if x2d.dtype != mm_dtype:
        x2d = x2d.astype(mm_dtype)

    # --- VMEM-budget-driven tile selection ---------------------------------
    budget = _vmem_budget_bytes()
    tm_eff = min(_round_up(tm, row_align), _round_up(M, row_align))
    th_cap = min(_round_up(th, 128), _round_up(H, 128))
    th_eff = th_cap
    while _vmem_estimate(tm_eff, th_eff, dim, mm_bytes, out_bytes) > budget:
        if th_eff > 256:
            th_eff = _round_up(th_eff // 2, 128)
        elif tm_eff > 128:
            tm_eff = _round_up(tm_eff // 2, row_align)
        elif th_eff > 128:
            th_eff = 128
        else:
            break
    # Grow TH back if the (possibly shrunk) TM leaves room: bigger TH halves
    # accumulator RMW traffic and the number of per-step overheads.
    while (th_eff < th_cap and
           _vmem_estimate(tm_eff, min(2 * th_eff, th_cap), dim, mm_bytes,
                          out_bytes) <= budget):
        th_eff = min(2 * th_eff, th_cap)

    # --- cdiv-balanced (tight) padding; keep >= 2 M-tiles for megacore ------
    nm = _cdiv(M, tm_eff)
    if nm == 1 and M > row_align:
        nm = 2                               # second TensorCore gets work (v7x)
    tm_eff = _round_up(_cdiv(M, nm), row_align)
    M_pad = nm * tm_eff

    nk = _cdiv(H, th_eff)
    th_eff = _round_up(_cdiv(H, nk), 128)
    H_pad = nk * th_eff

    if M_pad != M:
        x2d = jnp.pad(x2d, ((0, M_pad - M), (0, 0)))
    if H_pad != H:
        ph = H_pad - H
        w1 = jnp.pad(w1, ((0, 0), (0, ph)))
        w3 = jnp.pad(w3, ((0, 0), (0, ph)))
        b1 = jnp.pad(b1, ((0, 0), (0, ph)))
        b3 = jnp.pad(b3, ((0, 0), (0, ph)))
        w2 = jnp.pad(w2, ((0, ph), (0, 0)))   # zero rows -> padded H contributes 0

    # --- pack [W1|W3] / [b1|b3] per H-tile: one weight stream + one wide MXU
    #     up-projection per grid step.  (One-time repack; pre-pack at weight
    #     load time in a real model.)
    w13 = jnp.concatenate(
        [w1.reshape(dim, nk, th_eff), w3.reshape(dim, nk, th_eff)], axis=2,
    ).reshape(dim, 2 * H_pad).astype(mm_dtype)
    b13 = jnp.concatenate(
        [b1.reshape(1, nk, th_eff), b3.reshape(1, nk, th_eff)], axis=2,
    ).reshape(1, 2 * H_pad)
    w2 = w2.astype(mm_dtype)

    kernel = functools.partial(_ffn_kernel, th=th_eff, nk=nk)

    out = pl.pallas_call(
        kernel,
        out_shape=jax.ShapeDtypeStruct((M_pad, dim), out_dtype),
        grid_spec=pltpu.PrefetchScalarGridSpec(
            num_scalar_prefetch=0,
            grid=(nm, nk),
            in_specs=[
                pl.BlockSpec((tm_eff, dim), lambda i, k: (i, 0)),       # x
                pl.BlockSpec((dim, 2 * th_eff), lambda i, k: (0, k)),   # [W1|W3]
                pl.BlockSpec((1, 2 * th_eff), lambda i, k: (0, k)),     # [b1|b3]
                pl.BlockSpec((th_eff, dim), lambda i, k: (k, 0)),       # W2
                pl.BlockSpec((1, dim), lambda i, k: (0, 0)),            # b2
            ],
            out_specs=pl.BlockSpec((tm_eff, dim), lambda i, k: (i, 0)),
            scratch_shapes=[pltpu.VMEM((tm_eff, dim), jnp.float32)],
        ),
        compiler_params=pltpu.CompilerParams(
            dimension_semantics=("parallel", "arbitrary"),
            vmem_limit_bytes=int(budget),
        ),
    )(x2d, w13, b13, w2, b2)

    if M_pad != M:
        out = out[:M]
    return out.reshape(orig_shape)


def llama_ffn_hidden_dim(dim, hidden_dim, multiple_of, ffn_dim_multiplier):
    hidden_dim = int(2 * hidden_dim / 3)
    if ffn_dim_multiplier is not None:
        hidden_dim = int(ffn_dim_multiplier * hidden_dim)
    hidden_dim = multiple_of * ((hidden_dim + multiple_of - 1) // multiple_of)
    return hidden_dim


def reference_ffn(x, w1, b1, w2, b2, w3, b3):
    h1 = x @ w1 + b1[0]
    h3 = x @ w3 + b3[0]
    return (jax.nn.silu(h1) * h3) @ w2 + b2[0]


if __name__ == "__main__":
    # Module hyperparameters (same arithmetic as the PyTorch __init__).
    dim = 256
    init_hidden = 768
    multiple_of = 128
    ffn_dim_multiplier = None
    H = llama_ffn_hidden_dim(dim, init_hidden, multiple_of, ffn_dim_multiplier)  # -> 512

    batch, seq = 2, 8
    key = jax.random.PRNGKey(0)
    k_x, k_x2, k_w1, k_b1, k_w2, k_b2, k_w3, k_b3 = jax.random.split(key, 8)

    x = jax.random.normal(k_x, (batch, seq, dim), dtype=jnp.float32)

    # Deterministic nn.Linear-like init; stored pre-transposed as (in, out).
    w1 = jax.random.uniform(k_w1, (dim, H), jnp.float32, -1, 1) / jnp.sqrt(dim)
    b1 = jax.random.uniform(k_b1, (1, H), jnp.float32, -1, 1) / jnp.sqrt(dim)
    w3 = jax.random.uniform(k_w3, (dim, H), jnp.float32, -1, 1) / jnp.sqrt(dim)
    b3 = jax.random.uniform(k_b3, (1, H), jnp.float32, -1, 1) / jnp.sqrt(dim)
    w2 = jax.random.uniform(k_w2, (H, dim), jnp.float32, -1, 1) / jnp.sqrt(H)
    b2 = jax.random.uniform(k_b2, (1, dim), jnp.float32, -1, 1) / jnp.sqrt(H)

    ref = reference_ffn(x.reshape(-1, dim), w1, b1, w2, b2, w3, b3).reshape(x.shape)

    # f32 path, single H step (nk == 1 fused-output path).
    out = jax.block_until_ready(feed_forward_pallas(x, w1, b1, w2, b2, w3, b3))
    assert out.shape == x.shape
    assert jnp.allclose(out, ref, atol=2e-3, rtol=2e-3), "f32 mismatch vs reference"

    # Non-tile-aligned M + multi-step H reduction (exercises cdiv-balanced
    # padding, megacore M split, and the first/middle/last accumulator path).
    x_odd = jax.random.normal(k_x2, (3, 5, dim), dtype=jnp.float32)
    ref_odd = reference_ffn(x_odd.reshape(-1, dim), w1, b1, w2, b2, w3, b3
                            ).reshape(x_odd.shape)
    out_odd = jax.block_until_ready(
        feed_forward_pallas(x_odd, w1, b1, w2, b2, w3, b3, th=128))
    assert out_odd.shape == x_odd.shape
    assert jnp.allclose(out_odd, ref_odd, atol=2e-3, rtol=2e-3), \
        "ragged-M mismatch vs reference"

    # bf16 params/activations path (bf16 MXU matmuls, f32 accumulation) —
    # the recommended production configuration.
    xb16 = x.astype(jnp.bfloat16)
    pb16 = [a.astype(jnp.bfloat16) for a in (w1, b1, w2, b2, w3, b3)]
    out_b16 = jax.block_until_ready(
        feed_forward_pallas(xb16, *pb16, th=256, out_dtype=jnp.float32))
    assert out_b16.shape == x.shape
    assert bool(jnp.all(jnp.isfinite(out_b16)))
    assert jnp.allclose(out_b16, ref, atol=1e-1, rtol=1e-1), "bf16 mismatch vs reference"

    print("KERNEL_OK")
</pallas_src>

<mosaic_0001>
module attributes {stable_mosaic.version = 11 : i64} {
  func.func @_ffn_kernel(%arg0: i32, %arg1: i32, %arg2: memref<8x256xf32, #tpu.memory_space<vmem>>, %arg3: memref<256x1024xf32, #tpu.memory_space<vmem>>, %arg4: memref<1x1024xf32, #tpu.memory_space<vmem>>, %arg5: memref<512x256xf32, #tpu.memory_space<vmem>>, %arg6: memref<1x256xf32, #tpu.memory_space<vmem>>, %arg7: memref<8x256xf32, #tpu.memory_space<vmem>>, %arg8: memref<8x256xf32, #tpu.memory_space<vmem>>) attributes {dimension_semantics = [#tpu.dimension_semantics<parallel>, #tpu.dimension_semantics<arbitrary>], iteration_bounds = array<i64: 2, 1>, scalar_prefetch = 0 : i64, scratch_operands = 1 : i64, tpu.core_type = #tpu.core_type<tc>, window_params = [{transform_indices = @transform_0, window_bounds = array<i64: 8, 256>}, {transform_indices = @transform_1, window_bounds = array<i64: 256, 1024>}, {transform_indices = @transform_2, window_bounds = array<i64: 1, 1024>}, {transform_indices = @transform_3, window_bounds = array<i64: 512, 256>}, {pipeline_mode = #tpu.pipeline_mode<synchronous>, transform_indices = @transform_4, window_bounds = array<i64: 1, 256>}, {transform_indices = @transform_5, window_bounds = array<i64: 8, 256>}]} {
    %c0 = arith.constant 0 : index
    %c0_0 = arith.constant 0 : index
    %0 = vector.load %arg2[%c0, %c0_0] : memref<8x256xf32, #tpu.memory_space<vmem>>, vector<8x256xf32>
    %c0_1 = arith.constant 0 : index
    %c0_2 = arith.constant 0 : index
    %1 = vector.load %arg3[%c0_1, %c0_2] : memref<256x1024xf32, #tpu.memory_space<vmem>>, vector<256x1024xf32>
    %cst = arith.constant dense<0.000000e+00> : vector<8x1024xf32>
    %2 = tpu.matmul %0, %1, %cst {dimension_numbers = #tpu.dot_dimension_numbers<[1], [0], [0], [1], [0, 0, 1, 1], [], []>} : vector<8x256xf32>, vector<256x1024xf32>, vector<8x1024xf32> -> vector<8x1024xf32>
    %c0_3 = arith.constant 0 : index
    %c0_4 = arith.constant 0 : index
    %3 = vector.load %arg4[%c0_3, %c0_4] : memref<1x1024xf32, #tpu.memory_space<vmem>>, vector<1x1024xf32>
    %4 = vector.broadcast %3 : vector<1x1024xf32> to vector<8x1024xf32>
    %5 = arith.addf %2, %4 : vector<8x1024xf32>
    %6 = vector.extract_strided_slice %5 {offsets = [0, 0], sizes = [8, 512], strides = [1, 1]} : vector<8x1024xf32> to vector<8x512xf32>
    %7 = vector.extract_strided_slice %5 {offsets = [0, 512], sizes = [8, 512], strides = [1, 1]} : vector<8x1024xf32> to vector<8x512xf32>
    %8 = arith.negf %6 : vector<8x512xf32>
    %9 = math.exp %8 : vector<8x512xf32>
    %cst_5 = arith.constant 1.000000e+00 : f32
    %10 = vector.broadcast %cst_5 : f32 to vector<8x512xf32>
    %11 = arith.addf %10, %9 : vector<8x512xf32>
    %12 = arith.divf %10, %11 : vector<8x512xf32>
    %13 = arith.mulf %6, %12 : vector<8x512xf32>
    %14 = arith.mulf %13, %7 : vector<8x512xf32>
    %c0_6 = arith.constant 0 : index
    %c0_7 = arith.constant 0 : index
    %15 = vector.load %arg5[%c0_6, %c0_7] : memref<512x256xf32, #tpu.memory_space<vmem>>, vector<512x256xf32>
    %cst_8 = arith.constant dense<0.000000e+00> : vector<8x256xf32>
    %16 = tpu.matmul %14, %15, %cst_8 {dimension_numbers = #tpu.dot_dimension_numbers<[1], [0], [0], [1], [0, 0, 1, 1], [], []>} : vector<8x512xf32>, vector<512x256xf32>, vector<8x256xf32> -> vector<8x256xf32>
    %c0_9 = arith.constant 0 : index
    %c0_10 = arith.constant 0 : index
    %17 = vector.load %arg6[%c0_9, %c0_10] : memref<1x256xf32, #tpu.memory_space<vmem>>, vector<1x256xf32>
    %18 = vector.broadcast %17 : vector<1x256xf32> to vector<8x256xf32>
    %19 = arith.addf %16, %18 : vector<8x256xf32>
    %c0_11 = arith.constant 0 : index
    %c0_12 = arith.constant 0 : index
    %20 = vector.load %arg7[%c0_11, %c0_12] : memref<8x256xf32, #tpu.memory_space<vmem>>, vector<8x256xf32>
    tpu.vector_store %arg7[%c0_11, %c0_12], %19 {strides = array<i32>} : memref<8x256xf32, #tpu.memory_space<vmem>>, vector<8x256xf32>,
    return
  }
  func.func @transform_0(%arg0: i32, %arg1: i32) -> (i32, i32) {
    %c0_i32 = arith.constant 0 : i32
    %c0_i32_0 = arith.constant 0 : i32
    return %arg0, %c0_i32 : i32, i32
  }
  func.func @transform_1(%arg0: i32, %arg1: i32) -> (i32, i32) {
    %c0_i32 = arith.constant 0 : i32
    %c0_i32_0 = arith.constant 0 : i32
    return %c0_i32, %arg1 : i32, i32
  }
  func.func @transform_2(%arg0: i32, %arg1: i32) -> (i32, i32) {
    %c0_i32 = arith.constant 0 : i32
    %c0_i32_0 = arith.constant 0 : i32
    return %c0_i32, %arg1 : i32, i32
  }
  func.func @transform_3(%arg0: i32, %arg1: i32) -> (i32, i32) {
    %c0_i32 = arith.constant 0 : i32
    %c0_i32_0 = arith.constant 0 : i32
    return %arg1, %c0_i32 : i32, i32
  }
  func.func @transform_4(%arg0: i32, %arg1: i32) -> (i32, i32) {
    %c0_i32 = arith.constant 0 : i32
    %c0_i32_0 = arith.constant 0 : i32
    %c0_i32_1 = arith.constant 0 : i32
    return %c0_i32, %c0_i32_0 : i32, i32
  }
  func.func @transform_5(%arg0: i32, %arg1: i32) -> (i32, i32) {
    %c0_i32 = arith.constant 0 : i32
    %c0_i32_0 = arith.constant 0 : i32
    return %arg0, %c0_i32 : i32, i32
  }
}

</mosaic_0001>

<bundles_post_ra>
// kernel: tpu_custom_call.1
= control target key start
LH: loop header
LB: loop body
LE: loop exit
PB: predicated region body
PF: predicated region fallthrough
CT: control target
= control target key end

     0   :  { %10 = vsyncpa [#allocation4], 0  ;;  %s2450_s0 = inlined_call_operand.hbm [shape: f32[16,256], index: 0, kind: input, shape index: {}]   ;;  %s2451_s1 = inlined_call_operand.hbm [shape: f32[256,1024], index: 1, kind: input, shape index: {}]   ;;  %s2452_s2 = inlined_call_operand.hbm [shape: f32[1,1024], index: 2, kind: input, shape index: {}]   ;;  %s2453_s3 = inlined_call_operand.hbm [shape: f32[512,256], index: 3, kind: input, shape index: {}]   ;;  %s2454_s4 = inlined_call_operand.vmem [shape: f32[1,256], index: 4, kind: input, shape index: {}]   ;;  %s2455_s5 = inlined_call_operand.hbm [shape: f32[16,256], index: 5, kind: output, shape index: {}]  }
   0x1   :  { %12 = vsyncpa [#allocation4 + $0x1], 0 }
   0x2   :  { %13 = vsyncpa [#allocation7], 0 }
   0x3   :  { %14 = vsyncpa [#allocation10], 0 }
   0x4   :  { %15 = vsyncpa [#allocation5], 0 }
   0x5   :  { %17 = vsyncpa [#allocation5 + $0x1], 0  ;;  %s2124_s18 = smov 0   ;;  %s2126_s19 = smov 0  }
   0x6   :  { %s2128_s20 = smov 0   ;;  %s2130_s21 = smov 0  }
   0x7   :  { %s2132_s22 = smov 0   ;;  %s2134_s23 = smov 0  }
   0x8 LB: > { %2462 = sst [smem:[#allocation16_spill]] %s2063_s18  ;;  %s1351_s24 = sadd.s32 4294967295, %s2083_s23   ;;  %s2083_s23 = sphi %s2134_s23, %s23_s23   ;;  %s2079_s22 = sphi %s2132_s22, %s2485_s22   ;;  %s2075_s21 = sphi %s2130_s21, %s2484_s21   ;;  %s2071_s20 = sphi %s2128_s20, %s2483_s20   ;;  %s2067_s19 = sphi %s2126_s19, %s2482_s19   ;;  %s2063_s18 = sphi %s2124_s18, %s2481_s18  }
   0x9   : > { %s1352_s25 = sadd.s32 4294967294, %s2083_s23   ;;  %p55_p0 = scmp.ne.s32.totalorder %s2067_s19, %s2063_s18 }
   0xa   : > { %p2158_p1 = scmp.eq.s32.totalorder %s1351_s24, 0  ;;  %p2162_p2 = scmp.eq.s32.totalorder %s1351_s24, 1 }
   0xb   : > { %p184_p3 = scmp.eq.s32.totalorder %s1352_s25, 1  ;;  %p1353_p5 = scmp.ge.s32.totalorder %s2083_s23, 1 }
   0xc   : > { %s2463_s26 = scalar_select %p2158_p1, 1, 0 }
   0xd   : > { %s2464_s27 = scalar_select %p2162_p2, 1, 0 }
   0xe   : > { %p2168_p4 = por %p2158_p1, %p55_p0  ;;  %p2173_p6 = por %p184_p3, %p55_p0 }
   0xf   : > { %p191_p7 = scmp.lt.s32.totalorder %s2083_s23, 3  ;;  %s2085_s6 = smov [#allocation6]  }
  0x10   : > { %s2465_s28 = scalar_select %p2168_p4, 1, 0 }
  0x11   : > { %s2466_s29 = scalar_select %p2173_p6, 1, 0 }
  0x12   : > { %p2178_p8 = pnand %p1353_p5, %p191_p7  ;;  %s206_s7 = sshll.u32 %s2085_s6, 4  ;;  %s2182_s7 = int_to_ptr.vmem [resolvable:$true] %s206_s7 }
  0x13   : > { %2467 = sst [smem:[#allocation17_spill]] %s2466_s29  ;;  %s2086_s9 = smov [#allocation8]  }
  0x14   : > { %s2468_s30 = scalar_select %p2178_p8, 1, 0 }
  0x15   : > { %p1782_p9 = pneg %p2178_p8  ;;  %s223_s10 = sshll.u32 %s2086_s9, 4  ;;  %s2193_s10 = int_to_ptr.vmem [resolvable:$true] %s223_s10 }
  0x16   : > { %s2087_s11 = smov [#allocation9]   ;;  %s1879_s15 = scalar_lea.hbm %s2451_s1, 32768 }
  0x17   : > { %p2189_p11 = pnand %p1782_p9, %p2158_p1  ;;  %s2195_s12 = sshll.u32 %s2087_s11, 4  ;;  %s238_s12 = int_to_ptr.vmem [resolvable:$true] %s2195_s12 }
  0x18   : > { %p1880_p12 = scmp.ne.s32.totalorder %s2451_s1, %s1879_s15  ;;  %p1886_p5 = scmp.lt.u32.totalorder %s1879_s15, %s2451_s1 }
  0x19   : > { %p2205_p13 = pneg %p2189_p11 }
  0x1b   : > { %p1882_p0 = pnand %p2205_p13, %p1880_p12 }
  0x1d   : > { %p1883_p3 = pneg %p1882_p0 }
  0x1f   : > { %p1888_p7 = pnand %p1886_p5, %p1883_p3 }
  0x21   : > { %1891 = shalt.err (!%p1888_p7)
}
  0x22   : > { %s1892_s9 = scalar_lea.vmem %s2182_s7, 32768  ;;  %p1900_p1 = scmp.lt.s32.totalorder %s2182_s7, %s2182_s7 }
  0x23   : > { %p1893_p9 = scmp.ne.s32.totalorder %s2182_s7, %s1892_s9  ;;  %p1901_p4 = scmp.lt.s32.totalorder %s1892_s9, %s1892_s9 }
  0x25   : > { %p1895_p10 = pnand %p1893_p9, %p2205_p13  ;;  %p1902_p12 = por %p1901_p4, %p1900_p1 }
  0x27   : > { %p1896_p6 = pneg %p1895_p10 }
  0x29   : > { %p1903_p0 = pnand %p1902_p12, %p1896_p6 }
  0x2b   : > { %1906 = shalt.err (!%p1903_p0)
}
  0x2c   : > { %s2088_s11 = smov 1024   ;;  %s2089_s13 = smov 64  }
  0x2d   : > { %1785 = dma.hbm_to_vmem [thread:$0]  (!%p2189_p11), %s2451_s1, 32768, %s2182_s7, [#allocation7], %s2088_s11, %s2088_s11, %s2089_s13  }
  0x2e   : > { %s1907_s25 = scalar_lea.hbm %s2452_s2, 128 }
  0x2f   : > { %p1908_p1 = scmp.ne.s32.totalorder %s2452_s2, %s1907_s25  ;;  %p1914_p10 = scmp.lt.u32.totalorder %s1907_s25, %s2452_s2 }
  0x31   : > { %p1910_p4 = pnand %p1908_p1, %p2205_p13 }
  0x33   : > { %p1911_p6 = pneg %p1910_p4 }
  0x35   : > { %p1916_p3 = pnand %p1914_p10, %p1911_p6 }
  0x37   : > { %1919 = shalt.err (!%p1916_p3)
}
  0x38   : > { %s1920_s7 = scalar_lea.vmem %s2193_s10, 128  ;;  %p1928_p12 = scmp.lt.s32.totalorder %s2193_s10, %s2193_s10 }
  0x39   : > { %p1921_p5 = scmp.ne.s32.totalorder %s2193_s10, %s1920_s7  ;;  %p1929_p0 = scmp.lt.s32.totalorder %s1920_s7, %s1920_s7 }
  0x3b   : > { %p1923_p7 = pnand %p1921_p5, %p2205_p13  ;;  %p1930_p1 = por %p1929_p0, %p1928_p12 }
  0x3d   : > { %p1924_p9 = pneg %p1923_p7 }
  0x3f   : > { %p1931_p4 = pnand %p1930_p1, %p1924_p9 }
  0x41   : > { %1934 = shalt.err (!%p1931_p4)
}
  0x42   : > { %1788 = dma.hbm_to_vmem [thread:$0]  (!%p2189_p11), %s2452_s2, 128, %s2193_s10, [#allocation7]  }
  0x43   : > { %s1935_s14 = scalar_lea.hbm %s2453_s3, 16384 }
  0x44   : > { %p1936_p6 = scmp.ne.s32.totalorder %s2453_s3, %s1935_s14  ;;  %p1942_p5 = scmp.lt.u32.totalorder %s1935_s14, %s2453_s3 }
  0x46   : > { %p1938_p10 = pnand %p1936_p6, %p2205_p13 }
  0x48   : > { %p1939_p3 = pneg %p1938_p10 }
  0x4a   : > { %p1944_p7 = pnand %p1942_p5, %p1939_p3 }
  0x4c   : > { %1947 = shalt.err (!%p1944_p7)
}
  0x4d   : > { %s1948_s6 = scalar_lea.vmem %s238_s12, 16384  ;;  %p1956_p1 = scmp.lt.s32.totalorder %s238_s12, %s238_s12 }
  0x4e   : > { %p1949_p9 = scmp.ne.s32.totalorder %s238_s12, %s1948_s6  ;;  %p1957_p4 = scmp.lt.s32.totalorder %s1948_s6, %s1948_s6 }
  0x50   : > { %p1951_p12 = pnand %p1949_p9, %p2205_p13  ;;  %p1958_p8 = por %p1957_p4, %p1956_p1 }
  0x52   : > { %p1952_p0 = pneg %p1951_p12 }
  0x54   : > { %p1959_p2 = pnand %p1958_p8, %p1952_p0 }
  0x56   : > { %1962 = shalt.err (!%p1959_p2)
}
  0x57   : > { %s2090_s10 = smov 256   ;;  %s2091_s24 = smov 16  }
  0x58   : > { %1791 = dma.hbm_to_vmem [thread:$0]  (!%p2189_p11), %s2453_s3, 16384, %s238_s12, [#allocation10], %s2090_s10, %s2090_s10, %s2091_s24  }
  0x59   : > { %s42_s18 = sadd.s32 1, %s2071_s20  ;;  %s35_s29 = sadd.s32 1, %s2079_s22 }
  0x5a   : > { %p49_p2 = scmp.ne.s32.totalorder %s2071_s20, %s2067_s19  ;;  %p37_p8 = scmp.ge.s32.totalorder %s35_s29, 2 }
  0x5b   : > { %p50_p13 = scmp.eq.s32.totalorder %s2083_s23, 0  ;;  %p2471_p6 = scmp.ne.s32.totalorder %s2464_s27, 0 }
  0x5c   : > { %p1803_p3 = scmp.lt.s32.totalorder %s2083_s23, 2  ;;  %s2487_s29 = smov (%p37_p8, %s35_s29), 0 }
  0x5d   : > { %p2275_p10 = por %p2471_p6, %p49_p2  ;;  %p51_p5 = por %p50_p13, %p49_p2 }
  0x5e   : > { %s254_s8 = sand.u32 1, %s2071_s20   ;;  %s39_s13 = ssub.s32 %s2079_s22, %s2487_s29 }
  0x5f   : > { %p40_p7 = scmp.eq.s32.totalorder %s39_s13, 0  ;;  %s1358_s12 = sshll.u32 %s254_s8, 4 }
  0x60   : > { %s1376_s14 = sshll.u32 %s2079_s22, 8  ;;  %s258_s25 = scalar_lea.vmem [#allocation3], %s1358_s12 }
  0x61   : > { %s2287_s15 = scalar_select %p40_p7, %s2071_s20, %s42_s18  }
  0x62   : > { %s2292_s27 = scalar_lea.hbm %s2450_s0, %s1376_s14  ;;  %s266_s6 = sshll.u32 %s258_s25, 4  ;;  %s2294_s6 = int_to_ptr.vmem [resolvable:$true] %s266_s6 }
  0x63   : > { %p2298_p11 = pnand %p1803_p3, %p51_p5  ;;  %s255_s24 = scalar_lea.sflag [#allocation4], %s254_s8 }
  0x64   : > { %s1963_s9 = scalar_lea.hbm %s2292_s27, 256  ;;  %s1968_s13 = scalar_lea.hbm %s2450_s0, 512 }
  0x65   : > { %p1964_p9 = scmp.ne.s32.totalorder %s2292_s27, %s1963_s9  ;;  %p1965_p12 = pneg %p2298_p11 }
  0x66   : > { %p1969_p4 = scmp.lt.u32.totalorder %s2292_s27, %s2450_s0  ;;  %p1970_p2 = scmp.lt.u32.totalorder %s1968_s13, %s1963_s9 }
  0x67   : > { %p1966_p0 = pnand %p1965_p12, %p1964_p9  ;;  %p1972_p13 = scmp.lt.u32.totalorder %s1963_s9, %s2292_s27 }
  0x68   : > { %p1971_p8 = por %p1970_p2, %p1969_p4 }
  0x69   : > { %p1967_p1 = pneg %p1966_p0 }
  0x6a   : > { %p1973_p6 = por %p1972_p13, %p1971_p8 }
  0x6c   : > { %p1974_p3 = pnand %p1973_p6, %p1967_p1 }
  0x6e   : > { %1977 = shalt.err (!%p1974_p3)
}
  0x6f   : > { %s1978_s8 = scalar_lea.vmem %s2294_s6, 256  ;;  %s2092_s16 = smov [#allocation3]  }
  0x70   : > { %p1979_p5 = scmp.ne.s32.totalorder %s2294_s6, %s1978_s8  ;;  %s1983_s17 = sshll.u32 %s2092_s16, 4  ;;  %s1984_s17 = int_to_ptr.vmem [resolvable:$false] %s1983_s17 }
  0x71   : > { %s1985_s25 = scalar_lea.vmem %s1984_s17, 512  ;;  %p1986_p0 = scmp.lt.s32.totalorder %s2294_s6, %s1984_s17 }
  0x72   : > { %p1981_p7 = pnand %p1979_p5, %p1965_p12  ;;  %p1987_p4 = scmp.lt.s32.totalorder %s1985_s25, %s1978_s8 }
  0x74   : > { %p1982_p9 = pneg %p1981_p7  ;;  %p1988_p2 = por %p1987_p4, %p1986_p0 }
  0x76   : > { %p1989_p8 = pnand %p1988_p2, %p1982_p9 }
  0x78   : > { %1992 = shalt.err (!%p1989_p8)
}
  0x79   : > { %1795 = dma.hbm_to_vmem [thread:$0]  (!%p2298_p11), %s2292_s27, 256, %s2294_s6, %s255_s24  }
  0x7a   : > { %p2474_p1 = scmp.ne.s32.totalorder %s2468_s30, 0 }
  0x7b   : > { %s2330_s9 = sand.u32 (!%p2474_p1), 1, %s2067_s19   ;;  %p2475_p12 = scmp.ne.s32.totalorder (!%p2474_p1), %s2465_s28, 0 }
  0x7c   : > { %275 = sbr.rel (%p2474_p1) target bundleno = 781 (0x30d), region = 40  ;;  %s1362_s7 = sshll.u32 (!%p2474_p1), %s2330_s9, 4 }
  0x7d   : > { %s278_s18 = scalar_lea.sflag (!%p2474_p1), [#allocation4], %s2330_s9  ;;  %s2336_s13 = scalar_lea.vmem (!%p2474_p1), [#allocation3], %s1362_s7 }
  0x83   : > { %2046 = dma.done.wait (%p2475_p12), %s278_s18, 256  }
  0x84   : > { %2048 = vsyncadd (%p2475_p12), %s278_s18, 4294967040  ;;  %p2476_p11 = scmp.ne.s32.totalorder %s2463_s26, 0 }
  0x86   : > { %2050 = dma.done.wait (%p2476_p11), [#allocation7], 32896  }
  0x87   : > { %2052 = vsyncadd (%p2476_p11), [#allocation7], 4294934400 }
  0x88   : > { %2054 = dma.done.wait (%p2476_p11), [#allocation10], 16384  }
  0x89   : > { %2056 = vsyncadd (%p2476_p11), [#allocation10], 4294950912  ;;  %v326_v0 = vld [vmem:[#allocation6 + $0x8] sm:$0xff]  ;;  %v325_v2 = vld [vmem:[#allocation6] sm:$0xff]  ;;  %s1377_s30 = sshll.u32 %s2075_s21, 8  ;;  %s319_s27 = scalar_lea.vmem [#allocation11], %s1362_s7 }
  0x8a   : > { %v334_v1 = vld [vmem:[#allocation6 + $0x48] sm:$0xff]  ;;  %v333_v4 = vld [vmem:[#allocation6 + $0x40] sm:$0xff]  ;;  %s1238_s6 = sshll.u32 %s319_s27, 4  ;;  %s2401_s12 = scalar_lea.hbm %s2455_s5, %s1377_s30  ;;  %s2403_s6 = int_to_ptr.vmem [resolvable:$true] %s1238_s6 }
  0x8b   : > { %v1378_v3 = vpack.c.bf16 %v334_v1, %v326_v0  ;;  %v342_v5 = vld [vmem:[#allocation6 + $0x88] sm:$0xff]  ;;  %v1380_v7 = vpack.c.bf16 %v333_v4, %v325_v2  ;;  %v341_v9 = vld [vmem:[#allocation6 + $0x80] sm:$0xff]  ;;  %s1224_s21 = scalar_lea.sflag [#allocation5], %s2330_s9  ;;  %s1993_s14 = scalar_lea.vmem %s2403_s6, 256 }
  0x8c   : > { %v350_v6 = vld [vmem:[#allocation6 + $0xc8] sm:$0xff]  ;;  %v349_v10 = vld [vmem:[#allocation6 + $0xc0] sm:$0xff]  ;;  %p1994_p13 = scmp.ne.s32.totalorder %s2403_s6, %s1993_s14  ;;  %s2093_s8 = smov [#allocation11]  }
  0x8d   : > { %v1382_v8 = vpack.c.bf16 %v350_v6, %v342_v5  ;;  %v358_v11 = vld [vmem:[#allocation6 + $0x108] sm:$0xff]  ;;  %1379 = vmatprep.subr.bf16.mxu1 %v1378_v3  ;;  %v1384_v13 = vpack.c.bf16 %v349_v10, %v341_v9  ;;  %v357_v15 = vld [vmem:[#allocation6 + $0x100] sm:$0xff]  ;;  %s1997_s16 = sshll.u32 %s2093_s8, 4  ;;  %s1998_s16 = int_to_ptr.vmem [resolvable:$false] %s1997_s16 }
  0x8e   : > { %v366_v12 = vld [vmem:[#allocation6 + $0x148] sm:$0xff]  ;;  %1381 = vmatpush1.bf16.msra.mxu1 %v1380_v7  ;;  %v365_v16 = vld [vmem:[#allocation6 + $0x140] sm:$0xff]  ;;  %p1995_p6 = pnand %p1994_p13, %p2275_p10  ;;  %s1999_s17 = scalar_lea.vmem %s1998_s16, 512 }
  0x8f   : > { %1383 = vmatprep.subr.bf16.mxu1 %v1382_v8  ;;  %v1386_v14 = vpack.c.bf16 %v366_v12, %v358_v11  ;;  %v374_v17 = vld [vmem:[#allocation6 + $0x188] sm:$0xff]  ;;  %v1388_v19 = vpack.c.bf16 %v365_v16, %v357_v15  ;;  %v373_v21 = vld [vmem:[#allocation6 + $0x180] sm:$0xff]  ;;  %p2000_p5 = scmp.lt.s32.totalorder %s2403_s6, %s1998_s16  ;;  %p2001_p7 = scmp.lt.s32.totalorder %s1999_s17, %s1993_s14 }
  0x90   : > { %v382_v18 = vld [vmem:[#allocation6 + $0x1c8] sm:$0xff]  ;;  %v381_v22 = vld [vmem:[#allocation6 + $0x1c0] sm:$0xff]  ;;  %p1996_p3 = pneg %p1995_p6 }
  0x91   : > { %v1390_v20 = vpack.c.bf16 %v382_v18, %v374_v17  ;;  %v390_v23 = vld [vmem:[#allocation6 + $0x208] sm:$0xff]  ;;  %v329_v28 = vld [vmem:[#allocation6 + $0x20] sm:$0xff]  ;;  %v1392_v30 = vpack.c.bf16 %v381_v22, %v373_v21  ;;  %p2002_p9 = por %p2001_p7, %p2000_p5 }
  0x92   : > { %1385 = vmatpush1.bf16.msra.mxu1 %v1384_v13  ;;  %v398_v24 = vld [vmem:[#allocation6 + $0x248] sm:$0xff]  ;;  %v337_v29 = vld [vmem:[#allocation6 + $0x60] sm:$0xff] }
  0x93   : > { %1387 = vmatprep.subr.bf16.mxu1 %v1386_v14  ;;  %v330_v25 = vld [vmem:[#allocation6 + $0x28] sm:$0xff]  ;;  %v389_v31 = vld [vmem:[#allocation6 + $0x200] sm:$0xff]  ;;  %v1508_v32 = vpack.c.bf16 %v337_v29, %v329_v28  ;;  %v1394_v34 = vpack.c.bf16 %v398_v24, %v390_v23  ;;  %p2003_p0 = pnand %p2002_p9, %p1996_p3 }
  0x94   : > { %v338_v26 = vld [vmem:[#allocation6 + $0x68] sm:$0xff]  ;;  %v397_v35 = vld [vmem:[#allocation6 + $0x240] sm:$0xff] }
  0x95   : > { %v1506_v27 = vpack.c.bf16 %v338_v26, %v330_v25  ;;  %v346_v33 = vld [vmem:[#allocation6 + $0xa8] sm:$0xff]  ;;  %v345_v40 = vld [vmem:[#allocation6 + $0xa0] sm:$0xff]  ;;  %v1396_v45 = vpack.c.bf16 %v397_v35, %v389_v31 }
  0x96   : > { %1389 = vmatpush1.bf16.msra.mxu1 %v1388_v19  ;;  %v406_v36 = vld [vmem:[#allocation6 + $0x288] sm:$0xff]  ;;  %v353_v41 = vld [vmem:[#allocation6 + $0xe0] sm:$0xff] }
  0x97   : > { %1391 = vmatprep.subr.bf16.mxu1 %v1390_v20  ;;  %1507 = vmatprep.subr.bf16.mxu0 %v1506_v27  ;;  %v354_v37 = vld [vmem:[#allocation6 + $0xe8] sm:$0xff]  ;;  %v1512_v42 = vpack.c.bf16 %v353_v41, %v345_v40  ;;  %v405_v46 = vld [vmem:[#allocation6 + $0x280] sm:$0xff] }
  0x98   : > { %v414_v38 = vld [vmem:[#allocation6 + $0x2c8] sm:$0xff]  ;;  %1509 = vmatpush1.bf16.msra.mxu0 %v1508_v32  ;;  %v1510_v39 = vpack.c.bf16 %v354_v37, %v346_v33  ;;  %v361_v48 = vld [vmem:[#allocation6 + $0x120] sm:$0xff] }
  0x99   : > { %v362_v43 = vld [vmem:[#allocation6 + $0x128] sm:$0xff]  ;;  %v1398_v49 = vpack.c.bf16 %v414_v38, %v406_v36  ;;  %v413_v50 = vld [vmem:[#allocation6 + $0x2c0] sm:$0xff] }
  0x9a   : > { %v370_v44 = vld [vmem:[#allocation6 + $0x168] sm:$0xff]  ;;  %1393 = vmatpush1.bf16.msra.mxu1 %v1392_v30  ;;  %1511 = vmatprep.subr.bf16.mxu0 %v1510_v39  ;;  %v369_v52 = vld [vmem:[#allocation6 + $0x160] sm:$0xff]  ;;  %v1400_v60 = vpack.c.bf16 %v413_v50, %v405_v46 }
  0x9b   : > { %v1514_v47 = vpack.c.bf16 %v370_v44, %v362_v43  ;;  %1395 = vmatprep.subr.bf16.mxu1 %v1394_v34  ;;  %v422_v51 = vld [vmem:[#allocation6 + $0x308] sm:$0xff]  ;;  %v1516_v54 = vpack.c.bf16 %v369_v52, %v361_v48  ;;  %v377_v58 = vld [vmem:[#allocation6 + $0x1a0] sm:$0xff] }
  0x9c   : > { %v430_v53 = vld [vmem:[#allocation6 + $0x348] sm:$0xff]  ;;  %1513 = vmatpush1.bf16.msra.mxu0 %v1512_v42  ;;  %v385_v59 = vld [vmem:[#allocation6 + $0x1e0] sm:$0xff] }
  0x9d   : > { %v378_v55 = vld [vmem:[#allocation6 + $0x1a8] sm:$0xff]  ;;  %1515 = vmatprep.subr.bf16.mxu0 %v1514_v47  ;;  %v1402_v62 = vpack.c.bf16 %v430_v53, %v422_v51  ;;  %v421_v63 = vld [vmem:[#allocation6 + $0x300] sm:$0xff]  ;;  %v1520_v4 = vpack.c.bf16 %v385_v59, %v377_v58 }
  0x9e   : > { %v386_v56 = vld [vmem:[#allocation6 + $0x1e8] sm:$0xff]  ;;  %1397 = vmatpush1.bf16.msra.mxu1 %v1396_v45  ;;  %v429_v0 = vld [vmem:[#allocation6 + $0x340] sm:$0xff] }
  0x9f   : > { %v1518_v57 = vpack.c.bf16 %v386_v56, %v378_v55  ;;  %v394_v61 = vld [vmem:[#allocation6 + $0x228] sm:$0xff]  ;;  %1399 = vmatprep.subr.bf16.mxu1 %v1398_v49  ;;  %v393_v6 = vld [vmem:[#allocation6 + $0x220] sm:$0xff]  ;;  %v1404_v8 = vpack.c.bf16 %v429_v0, %v421_v63 }
  0xa0   : > { %v402_v1 = vld [vmem:[#allocation6 + $0x268] sm:$0xff]  ;;  %1517 = vmatpush1.bf16.msra.mxu0 %v1516_v54  ;;  %v401_v7 = vld [vmem:[#allocation6 + $0x260] sm:$0xff] }
  0xa1   : > { %v438_v2 = vld [vmem:[#allocation6 + $0x388] sm:$0xff]  ;;  %1519 = vmatprep.subr.bf16.mxu0 %v1518_v57  ;;  %v1522_v5 = vpack.c.bf16 %v402_v1, %v394_v61  ;;  %v437_v12 = vld [vmem:[#allocation6 + $0x380] sm:$0xff]  ;;  %v1524_v16 = vpack.c.bf16 %v401_v7, %v393_v6 }
  0xa2   : > { %v446_v3 = vld [vmem:[#allocation6 + $0x3c8] sm:$0xff]  ;;  %1401 = vmatpush1.bf16.msra.mxu1 %v1400_v60  ;;  %v445_v13 = vld [vmem:[#allocation6 + $0x3c0] sm:$0xff] }
  0xa3   : > { %v410_v9 = vld [vmem:[#allocation6 + $0x2a8] sm:$0xff]  ;;  %1403 = vmatprep.subr.bf16.mxu1 %v1402_v62  ;;  %v1406_v11 = vpack.c.bf16 %v446_v3, %v438_v2  ;;  %v409_v18 = vld [vmem:[#allocation6 + $0x2a0] sm:$0xff]  ;;  %v1408_v20 = vpack.c.bf16 %v445_v13, %v437_v12 }
  0xa4   : > { %v418_v10 = vld [vmem:[#allocation6 + $0x2e8] sm:$0xff]  ;;  %1521 = vmatpush1.bf16.msra.mxu0 %v1520_v4  ;;  %v417_v19 = vld [vmem:[#allocation6 + $0x2e0] sm:$0xff] }
  0xa5   : > { %v454_v14 = vld [vmem:[#allocation6 + $0x408] sm:$0xff]  ;;  %1523 = vmatprep.subr.bf16.mxu0 %v1522_v5  ;;  %v1526_v17 = vpack.c.bf16 %v418_v10, %v410_v9  ;;  %v453_v24 = vld [vmem:[#allocation6 + $0x400] sm:$0xff]  ;;  %v1528_v28 = vpack.c.bf16 %v417_v19, %v409_v18 }
  0xa6   : > { %v462_v15 = vld [vmem:[#allocation6 + $0x448] sm:$0xff]  ;;  %1405 = vmatpush1.bf16.msra.mxu1 %v1404_v8  ;;  %v461_v25 = vld [vmem:[#allocation6 + $0x440] sm:$0xff] }
  0xa7   : > { %v426_v21 = vld [vmem:[#allocation6 + $0x328] sm:$0xff]  ;;  %1407 = vmatprep.subr.bf16.mxu1 %v1406_v11  ;;  %v1410_v23 = vpack.c.bf16 %v462_v15, %v454_v14  ;;  %v425_v30 = vld [vmem:[#allocation6 + $0x320] sm:$0xff]  ;;  %v1412_v32 = vpack.c.bf16 %v461_v25, %v453_v24 }
  0xa8   : > { %v434_v22 = vld [vmem:[#allocation6 + $0x368] sm:$0xff]  ;;  %1525 = vmatpush1.bf16.msra.mxu0 %v1524_v16  ;;  %v433_v31 = vld [vmem:[#allocation6 + $0x360] sm:$0xff] }
  0xa9   : > { %v470_v26 = vld [vmem:[#allocation6 + $0x488] sm:$0xff]  ;;  %1527 = vmatprep.subr.bf16.mxu0 %v1526_v17  ;;  %v1530_v29 = vpack.c.bf16 %v434_v22, %v426_v21  ;;  %v469_v36 = vld [vmem:[#allocation6 + $0x480] sm:$0xff]  ;;  %v1532_v41 = vpack.c.bf16 %v433_v31, %v425_v30 }
  0xaa   : > { %v478_v27 = vld [vmem:[#allocation6 + $0x4c8] sm:$0xff]  ;;  %1409 = vmatpush1.bf16.msra.mxu1 %v1408_v20  ;;  %v477_v37 = vld [vmem:[#allocation6 + $0x4c0] sm:$0xff] }
  0xab   : > { %v442_v33 = vld [vmem:[#allocation6 + $0x3a8] sm:$0xff]  ;;  %1411 = vmatprep.subr.bf16.mxu1 %v1410_v23  ;;  %v1414_v35 = vpack.c.bf16 %v478_v27, %v470_v26  ;;  %v441_v43 = vld [vmem:[#allocation6 + $0x3a0] sm:$0xff]  ;;  %v1416_v45 = vpack.c.bf16 %v477_v37, %v469_v36 }
  0xac   : > { %v450_v34 = vld [vmem:[#allocation6 + $0x3e8] sm:$0xff]  ;;  %1529 = vmatpush1.bf16.msra.mxu0 %v1528_v28  ;;  %v449_v44 = vld [vmem:[#allocation6 + $0x3e0] sm:$0xff] }
  0xad   : > { %v2351_v38 = vld [vmem:[%s2336_s13 + $0x8] sm:$0xff]  ;;  %1531 = vmatprep.subr.bf16.mxu0 %v1530_v29  ;;  %v1534_v42 = vpack.c.bf16 %v450_v34, %v442_v33  ;;  %v485_v49 = vld [vmem:[#allocation6 + $0x500] sm:$0xff]  ;;  %v1536_v53 = vpack.c.bf16 %v449_v44, %v441_v43 }
  0xae   : > { %v486_v39 = vld [vmem:[#allocation6 + $0x508] sm:$0xff]  ;;  %687 = vmatprep.mubr.f32.mxu1 %v2351_v38  ;;  %829 = vmatprep.mubr.f32.mxu0 %v2351_v38  ;;  %v493_v50 = vld [vmem:[#allocation6 + $0x540] sm:$0xff] }
  0xaf   : > { %v494_v40 = vld [vmem:[#allocation6 + $0x548] sm:$0xff]  ;;  %1413 = vmatpush1.bf16.msra.mxu1 %v1412_v32  ;;  %v457_v55 = vld [vmem:[#allocation6 + $0x420] sm:$0xff]  ;;  %v1420_v57 = vpack.c.bf16 %v493_v50, %v485_v49  ;;  %v336_v49 = vld [vmem:[#allocation6 + $0x58] sm:$0xff] }
  0xb0   : > { %v458_v46 = vld [vmem:[#allocation6 + $0x428] sm:$0xff]  ;;  %1415 = vmatprep.subr.bf16.mxu1 %v1414_v35  ;;  %v1418_v48 = vpack.c.bf16 %v494_v40, %v486_v39  ;;  %1533 = vmatpush1.bf16.msra.mxu0 %v1532_v41  ;;  %v465_v56 = vld [vmem:[#allocation6 + $0x460] sm:$0xff] }
  0xb1   : > { %v466_v47 = vld [vmem:[#allocation6 + $0x468] sm:$0xff]  ;;  %1535 = vmatprep.subr.bf16.mxu0 %v1534_v42  ;;  %v501_v61 = vld [vmem:[#allocation6 + $0x580] sm:$0xff]  ;;  %v1540_v1 = vpack.c.bf16 %v465_v56, %v457_v55 }
  0xb2   : > { %v502_v51 = vld [vmem:[#allocation6 + $0x588] sm:$0xff]  ;;  %v1538_v54 = vpack.c.bf16 %v466_v47, %v458_v46  ;;  %v509_v62 = vld [vmem:[#allocation6 + $0x5c0] sm:$0xff] }
  0xb3   : > { %v510_v52 = vld [vmem:[#allocation6 + $0x5c8] sm:$0xff]  ;;  %1417 = vmatpush1.bf16.msra.mxu1 %v1416_v45  ;;  %v473_v3 = vld [vmem:[#allocation6 + $0x4a0] sm:$0xff]  ;;  %v1424_v5 = vpack.c.bf16 %v509_v62, %v501_v61  ;;  %v352_v61 = vld [vmem:[#allocation6 + $0xd8] sm:$0xff] }
  0xb4   : > { %v474_v58 = vld [vmem:[#allocation6 + $0x4a8] sm:$0xff]  ;;  %1419 = vmatprep.subr.bf16.mxu1 %v1418_v48  ;;  %v1422_v60 = vpack.c.bf16 %v510_v52, %v502_v51  ;;  %1537 = vmatpush1.bf16.msra.mxu0 %v1536_v53  ;;  %v481_v4 = vld [vmem:[#allocation6 + $0x4e0] sm:$0xff]  ;;  %v328_v48 = vld [vmem:[#allocation6 + $0x18] sm:$0xff] }
  0xb5   : > { %v482_v59 = vld [vmem:[#allocation6 + $0x4e8] sm:$0xff]  ;;  %1539 = vmatprep.subr.bf16.mxu0 %v1538_v54  ;;  %v517_v9 = vld [vmem:[#allocation6 + $0x600] sm:$0xff]  ;;  %v1544_v13 = vpack.c.bf16 %v481_v4, %v473_v3 }
  0xb6   : > { %v518_v63 = vld [vmem:[#allocation6 + $0x608] sm:$0xff]  ;;  %v1542_v2 = vpack.c.bf16 %v482_v59, %v474_v58  ;;  %v525_v10 = vld [vmem:[#allocation6 + $0x640] sm:$0xff]  ;;  %v327_v58 = vld [vmem:[#allocation6 + $0x10] sm:$0xff] }
  0xb7   : > { %v526_v0 = vld [vmem:[#allocation6 + $0x648] sm:$0xff]  ;;  %1421 = vmatpush1.bf16.msra.mxu1 %v1420_v57  ;;  %v489_v15 = vld [vmem:[#allocation6 + $0x520] sm:$0xff]  ;;  %v1428_v17 = vpack.c.bf16 %v525_v10, %v517_v9  ;;  %v1442_v57 = vpack.c.bf16 %v336_v49, %v328_v48  ;;  %v335_v59 = vld [vmem:[#allocation6 + $0x50] sm:$0xff] }
  0xb8   : > { %v490_v6 = vld [vmem:[#allocation6 + $0x528] sm:$0xff]  ;;  %1423 = vmatprep.subr.bf16.mxu1 %v1422_v60  ;;  %v1426_v8 = vpack.c.bf16 %v526_v0, %v518_v63  ;;  %1541 = vmatpush1.bf16.msra.mxu0 %v1540_v1  ;;  %v497_v16 = vld [vmem:[#allocation6 + $0x560] sm:$0xff]  ;;  %v344_v60 = vld [vmem:[#allocation6 + $0x98] sm:$0xff]  ;;  %v1444_v3 = vpack.c.bf16 %v335_v59, %v327_v58 }
  0xb9   : > { %v498_v7 = vld [vmem:[#allocation6 + $0x568] sm:$0xff]  ;;  %1543 = vmatprep.subr.bf16.mxu0 %v1542_v2  ;;  %v533_v21 = vld [vmem:[#allocation6 + $0x680] sm:$0xff]  ;;  %v1548_v25 = vpack.c.bf16 %v497_v16, %v489_v15  ;;  %v360_v9 = vld [vmem:[#allocation6 + $0x118] sm:$0xff] }
  0xba   : > { %v534_v11 = vld [vmem:[#allocation6 + $0x688] sm:$0xff]  ;;  %v1546_v14 = vpack.c.bf16 %v498_v7, %v490_v6  ;;  %v541_v22 = vld [vmem:[#allocation6 + $0x6c0] sm:$0xff]  ;;  %v1446_v6 = vpack.c.bf16 %v352_v61, %v344_v60  ;;  %v343_v7 = vld [vmem:[#allocation6 + $0x90] sm:$0xff] }
  0xbb   : > { %v542_v12 = vld [vmem:[#allocation6 + $0x6c8] sm:$0xff]  ;;  %1425 = vmatpush1.bf16.msra.mxu1 %v1424_v5  ;;  %v505_v27 = vld [vmem:[#allocation6 + $0x5a0] sm:$0xff]  ;;  %v1432_v29 = vpack.c.bf16 %v541_v22, %v533_v21  ;;  %v368_v10 = vld [vmem:[#allocation6 + $0x158] sm:$0xff] }
  0xbc   : > { %v506_v18 = vld [vmem:[#allocation6 + $0x5a8] sm:$0xff]  ;;  %1427 = vmatprep.subr.bf16.mxu1 %v1426_v8  ;;  %v1430_v20 = vpack.c.bf16 %v542_v12, %v534_v11  ;;  %1545 = vmatpush1.bf16.msra.mxu0 %v1544_v13  ;;  %v513_v28 = vld [vmem:[#allocation6 + $0x5e0] sm:$0xff]  ;;  %v351_v8 = vld [vmem:[#allocation6 + $0xd0] sm:$0xff]  ;;  %v1450_v16 = vpack.c.bf16 %v368_v10, %v360_v9 }
  0xbd   : > { %v514_v19 = vld [vmem:[#allocation6 + $0x5e8] sm:$0xff]  ;;  %1547 = vmatprep.subr.bf16.mxu0 %v1546_v14  ;;  %v549_v33 = vld [vmem:[#allocation6 + $0x700] sm:$0xff]  ;;  %v1552_v37 = vpack.c.bf16 %v513_v28, %v505_v27  ;;  %v1448_v15 = vpack.c.bf16 %v351_v8, %v343_v7  ;;  %v400_v27 = vld [vmem:[#allocation6 + $0x258] sm:$0xff] }
  0xbe   : > { %v550_v23 = vld [vmem:[#allocation6 + $0x708] sm:$0xff]  ;;  %v1550_v26 = vpack.c.bf16 %v514_v19, %v506_v18  ;;  %v557_v34 = vld [vmem:[#allocation6 + $0x740] sm:$0xff]  ;;  %v367_v18 = vld [vmem:[#allocation6 + $0x150] sm:$0xff] }
  0xbf   : > { %v558_v24 = vld [vmem:[#allocation6 + $0x748] sm:$0xff]  ;;  %1429 = vmatpush1.bf16.msra.mxu1 %v1428_v17  ;;  %v521_v40 = vld [vmem:[#allocation6 + $0x620] sm:$0xff]  ;;  %v1436_v42 = vpack.c.bf16 %v557_v34, %v549_v33  ;;  %v359_v17 = vld [vmem:[#allocation6 + $0x110] sm:$0xff] }
  0xc0   : > { %v522_v30 = vld [vmem:[#allocation6 + $0x628] sm:$0xff]  ;;  %1431 = vmatprep.subr.bf16.mxu1 %v1430_v20  ;;  %v1434_v32 = vpack.c.bf16 %v558_v24, %v550_v23  ;;  %1549 = vmatpush1.bf16.msra.mxu0 %v1548_v25  ;;  %v529_v41 = vld [vmem:[#allocation6 + $0x660] sm:$0xff]  ;;  %v376_v19 = vld [vmem:[#allocation6 + $0x198] sm:$0xff]  ;;  %v1452_v22 = vpack.c.bf16 %v367_v18, %v359_v17 }
  0xc1   : > { %v530_v31 = vld [vmem:[#allocation6 + $0x668] sm:$0xff]  ;;  %1551 = vmatprep.subr.bf16.mxu0 %v1550_v26  ;;  %v565_v46 = vld [vmem:[#allocation6 + $0x780] sm:$0xff]  ;;  %v1556_v50 = vpack.c.bf16 %v529_v41, %v521_v40  ;;  %v384_v20 = vld [vmem:[#allocation6 + $0x1d8] sm:$0xff] }
  0xc2   : > { %v566_v35 = vld [vmem:[#allocation6 + $0x788] sm:$0xff]  ;;  %v1554_v39 = vpack.c.bf16 %v530_v31, %v522_v30  ;;  %v573_v47 = vld [vmem:[#allocation6 + $0x7c0] sm:$0xff]  ;;  %v1454_v23 = vpack.c.bf16 %v384_v20, %v376_v19  ;;  %v375_v24 = vld [vmem:[#allocation6 + $0x190] sm:$0xff] }
  0xc3   : > { %v574_v36 = vld [vmem:[#allocation6 + $0x7c8] sm:$0xff]  ;;  %1433 = vmatpush1.bf16.msra.mxu1 %v1432_v29  ;;  %v537_v52 = vld [vmem:[#allocation6 + $0x6a0] sm:$0xff]  ;;  %v1440_v54 = vpack.c.bf16 %v573_v47, %v565_v46  ;;  %v383_v25 = vld [vmem:[#allocation6 + $0x1d0] sm:$0xff] }
  0xc4   : > { %v538_v43 = vld [vmem:[#allocation6 + $0x6a8] sm:$0xff]  ;;  %1435 = vmatprep.subr.bf16.mxu1 %v1434_v32  ;;  %v1438_v45 = vpack.c.bf16 %v574_v36, %v566_v35  ;;  %1553 = vmatpush1.bf16.msra.mxu0 %v1552_v37  ;;  %v545_v53 = vld [vmem:[#allocation6 + $0x6e0] sm:$0xff]  ;;  %v392_v26 = vld [vmem:[#allocation6 + $0x218] sm:$0xff]  ;;  %v1456_v28 = vpack.c.bf16 %v383_v25, %v375_v24 }
  0xc5   : > { %v546_v44 = vld [vmem:[#allocation6 + $0x6e8] sm:$0xff]  ;;  %1555 = vmatprep.subr.bf16.mxu0 %v1554_v39  ;;  %v1560_v62 = vpack.c.bf16 %v545_v53, %v537_v52  ;;  %v553_v0 = vld [vmem:[#allocation6 + $0x720] sm:$0xff]  ;;  %v1458_v29 = vpack.c.bf16 %v400_v27, %v392_v26  ;;  %v391_v30 = vld [vmem:[#allocation6 + $0x210] sm:$0xff] }
  0xc6   : > { %v1558_v51 = vpack.c.bf16 %v546_v44, %v538_v43  ;;  %v554_v55 = vld [vmem:[#allocation6 + $0x728] sm:$0xff]  ;;  %v561_v1 = vld [vmem:[#allocation6 + $0x760] sm:$0xff]  ;;  %v399_v31 = vld [vmem:[#allocation6 + $0x250] sm:$0xff] }
  0xc7   : > { %1437 = vmatpush1.bf16.msra.mxu1 %v1436_v42  ;;  %v562_v56 = vld [vmem:[#allocation6 + $0x768] sm:$0xff]  ;;  %v2356_v2 = vld [vmem:[%s2336_s13] sm:$0xff]  ;;  %v1564_v11 = vpack.c.bf16 %v561_v1, %v553_v0  ;;  %v408_v32 = vld [vmem:[#allocation6 + $0x298] sm:$0xff]  ;;  %v1460_v34 = vpack.c.bf16 %v399_v31, %v391_v30 }
  0xc8   : > { %1439 = vmatprep.subr.bf16.mxu1 %v1438_v45  ;;  %1557 = vmatpush1.bf16.msra.mxu0 %v1556_v50  ;;  %v1562_v63 = vpack.c.bf16 %v562_v56, %v554_v55  ;;  %v570_v4 = vld [vmem:[#allocation6 + $0x7a8] sm:$0xff]  ;;  %v569_v13 = vld [vmem:[#allocation6 + $0x7a0] sm:$0xff]  ;;  %v416_v33 = vld [vmem:[#allocation6 + $0x2d8] sm:$0xff] }
  0xc9   : > { %1559 = vmatprep.subr.bf16.mxu0 %v1558_v51  ;;  %v578_v5 = vld [vmem:[#allocation6 + $0x7e8] sm:$0xff]  ;;  %v577_v14 = vld [vmem:[#allocation6 + $0x7e0] sm:$0xff]  ;;  %v1462_v35 = vpack.c.bf16 %v416_v33, %v408_v32  ;;  %v407_v36 = vld [vmem:[#allocation6 + $0x290] sm:$0xff] }
  0xca   : > { %v1566_v12 = vpack.c.bf16 %v578_v5, %v570_v4  ;;  %v1568_v21 = vpack.c.bf16 %v577_v14, %v569_v13  ;;  %v415_v37 = vld [vmem:[#allocation6 + $0x2d0] sm:$0xff]  ;;  %v424_v39 = vld [vmem:[#allocation6 + $0x318] sm:$0xff]  ;;  %v942_v48 = vld [vmem:[#allocation9 + $0x18] sm:$0xff] }
  0xcb   : > { %1441 = vmatpush1.bf16.msra.mxu1 %v1440_v54  ;;  %v432_v40 = vld [vmem:[#allocation6 + $0x358] sm:$0xff]  ;;  %v1464_v41 = vpack.c.bf16 %v415_v37, %v407_v36  ;;  %v423_v42 = vld [vmem:[#allocation6 + $0x310] sm:$0xff]  ;;  %v939_v49 = vld [vmem:[#allocation9] sm:$0xff] }
  0xcc   : > { %1443 = vmatprep.subr.bf16.mxu1 %v1442_v57  ;;  %1561 = vmatpush1.bf16.msra.mxu0 %v1560_v62  ;;  %v1466_v43 = vpack.c.bf16 %v432_v40, %v424_v39  ;;  %v431_v44 = vld [vmem:[#allocation6 + $0x350] sm:$0xff]  ;;  %v440_v45 = vld [vmem:[#allocation6 + $0x398] sm:$0xff]  ;;  %v946_v53 = vld [vmem:[#allocation9 + $0x38] sm:$0xff] }
  0xcd   : > { %1563 = vmatprep.subr.bf16.mxu0 %v1562_v63  ;;  %v448_v46 = vld [vmem:[#allocation6 + $0x3d8] sm:$0xff]  ;;  %v940_v47 = vld [vmem:[#allocation9 + $0x8] sm:$0xff]  ;;  %v1468_v54 = vpack.c.bf16 %v431_v44, %v423_v42  ;;  %v943_v57 = vld [vmem:[#allocation9 + $0x20] sm:$0xff] }
  0xce   : > { %688 = vmatmul.mubr.f32.vlgmr.msra.gmra.mrb[0].mxu1 %v2356_v2  ;;  %v1634_v50 = vpack.c.bf16 %v942_v48, %v940_v47  ;;  %v941_v51 = vld [vmem:[#allocation9 + $0x10] sm:$0xff]  ;;  %v944_v52 = vld [vmem:[#allocation9 + $0x28] sm:$0xff]  ;;  %v1470_v60 = vpack.c.bf16 %v448_v46, %v440_v45  ;;  %v950_v63 = vld [vmem:[#allocation9 + $0x58] sm:$0xff] }
  0xcf   : > { %1445 = vmatpush1.bf16.msra.mxu1 %v1444_v3  ;;  %758 = vmatprep.mubr.f32.mxu1 %v2351_v38  ;;  %v1636_v55 = vpack.c.bf16 %v941_v51, %v939_v49  ;;  %v1638_v56 = vpack.c.bf16 %v946_v53, %v944_v52  ;;  %v945_v58 = vld [vmem:[#allocation9 + $0x30] sm:$0xff]  ;;  %v948_v59 = vld [vmem:[#allocation9 + $0x48] sm:$0xff]  ;;  %v947_v5 = vld [vmem:[#allocation9 + $0x40] sm:$0xff] }
  0xd0   : > { %1447 = vmatprep.subr.bf16.mxu1 %v1446_v6  ;;  %1565 = vmatpush1.bf16.msra.mxu0 %v1564_v11  ;;  %v439_v61 = vld [vmem:[#allocation6 + $0x390] sm:$0xff]  ;;  %v456_v0 = vld [vmem:[#allocation6 + $0x418] sm:$0xff]  ;;  %v1640_v3 = vpack.c.bf16 %v945_v58, %v943_v57  ;;  %v1642_v4 = vpack.c.bf16 %v950_v63, %v948_v59  ;;  %v954_v9 = vld [vmem:[#allocation9 + $0x78] sm:$0xff] }
  0xd1   : > { %1567 = vmatprep.subr.bf16.mxu0 %v1566_v12  ;;  %v447_v62 = vld [vmem:[#allocation6 + $0x3d0] sm:$0xff]  ;;  %v464_v1 = vld [vmem:[#allocation6 + $0x458] sm:$0xff]  ;;  %v951_v17 = vld [vmem:[#allocation9 + $0x60] sm:$0xff] }
  0xd2   : > { %v949_v6 = vld [vmem:[#allocation9 + $0x50] sm:$0xff]  ;;  %v1472_v7 = vpack.c.bf16 %v447_v62, %v439_v61  ;;  %v952_v8 = vld [vmem:[#allocation9 + $0x68] sm:$0xff]  ;;  %v1474_v10 = vpack.c.bf16 %v464_v1, %v456_v0  ;;  %v962_v33 = vld [vmem:[#allocation9 + $0xb8] sm:$0xff] }
  0xd3   : > { %1449 = vmatpush1.bf16.msra.mxu1 %v1448_v15  ;;  %v455_v11 = vld [vmem:[#allocation6 + $0x410] sm:$0xff]  ;;  %v472_v13 = vld [vmem:[#allocation6 + $0x498] sm:$0xff]  ;;  %v1644_v15 = vpack.c.bf16 %v949_v6, %v947_v5  ;;  %v959_v42 = vld [vmem:[#allocation9 + $0xa0] sm:$0xff] }
  0xd4   : > { %1451 = vmatprep.subr.bf16.mxu1 %v1450_v16  ;;  %1569 = vmatpush1.bf16.msra.mxu0 %v1568_v21  ;;  %v463_v12 = vld [vmem:[#allocation6 + $0x450] sm:$0xff]  ;;  %v480_v14 = vld [vmem:[#allocation6 + $0x4d8] sm:$0xff]  ;;  %v1646_v16 = vpack.c.bf16 %v954_v9, %v952_v8  ;;  %v958_v21 = vld [vmem:[#allocation9 + $0x98] sm:$0xff] }
  0xd5   : > { %1635 = vmatprep.subr.bf16.mxu0 %v1634_v50  ;;  %v953_v18 = vld [vmem:[#allocation9 + $0x70] sm:$0xff]  ;;  %v1476_v19 = vpack.c.bf16 %v463_v12, %v455_v11  ;;  %v956_v20 = vld [vmem:[#allocation9 + $0x88] sm:$0xff]  ;;  %v966_v46 = vld [vmem:[#allocation9 + $0xd8] sm:$0xff] }
  0xd6   : > { %v479_v24 = vld [vmem:[#allocation6 + $0x4d0] sm:$0xff]  ;;  %v488_v25 = vld [vmem:[#allocation6 + $0x518] sm:$0xff]  ;;  %v1648_v27 = vpack.c.bf16 %v953_v18, %v951_v17  ;;  %v970_v58 = vld [vmem:[#allocation9 + $0xf8] sm:$0xff] }
  0xd7   : > { %1453 = vmatpush1.bf16.msra.mxu1 %v1452_v22  ;;  %830 = vmatmul.mubr.f32.vlgmr.msra.gmra.mrb[0].mxu0 %v2356_v2  ;;  %v1478_v22 = vpack.c.bf16 %v480_v14, %v472_v13  ;;  %v496_v26 = vld [vmem:[#allocation6 + $0x558] sm:$0xff]  ;;  %v960_v32 = vld [vmem:[#allocation9 + $0xa8] sm:$0xff] }
  0xd8   : > { %1455 = vmatprep.subr.bf16.mxu1 %v1454_v23  ;;  %1637 = vmatpush1.bf16.msra.mxu0 %v1636_v55  ;;  %v471_v23 = vld [vmem:[#allocation6 + $0x490] sm:$0xff]  ;;  %v957_v30 = vld [vmem:[#allocation9 + $0x90] sm:$0xff] }
  0xd9   : > { %1639 = vmatprep.subr.bf16.mxu0 %v1638_v56  ;;  %v1480_v31 = vpack.c.bf16 %v479_v24, %v471_v23  ;;  %v495_v36 = vld [vmem:[#allocation6 + $0x550] sm:$0xff]  ;;  %v504_v37 = vld [vmem:[#allocation6 + $0x598] sm:$0xff] }
  0xda   : > { %v512_v39 = vld [vmem:[#allocation6 + $0x5d8] sm:$0xff]  ;;  %v964_v45 = vld [vmem:[#allocation9 + $0xc8] sm:$0xff] }
  0xdb   : > { %1457 = vmatpush1.bf16.msra.mxu1 %v1456_v28  ;;  %v1650_v28 = vpack.c.bf16 %v958_v21, %v956_v20  ;;  %v1486_v47 = vpack.c.bf16 %v512_v39, %v504_v37  ;;  %v503_v48 = vld [vmem:[#allocation6 + $0x590] sm:$0xff]  ;;  %v520_v50 = vld [vmem:[#allocation6 + $0x618] sm:$0xff]  ;;  %v1658_v53 = vpack.c.bf16 %v966_v46, %v964_v45 }
  0xdc   : > { %1459 = vmatprep.subr.bf16.mxu1 %v1458_v29  ;;  %1641 = vmatpush1.bf16.msra.mxu0 %v1640_v3  ;;  %v955_v29 = vld [vmem:[#allocation9 + $0x80] sm:$0xff]  ;;  %v511_v49 = vld [vmem:[#allocation6 + $0x5d0] sm:$0xff]  ;;  %v528_v51 = vld [vmem:[#allocation6 + $0x658] sm:$0xff] }
  0xdd   : > { %1643 = vmatprep.subr.bf16.mxu0 %v1642_v4  ;;  %v1652_v40 = vpack.c.bf16 %v957_v30, %v955_v29  ;;  %v965_v55 = vld [vmem:[#allocation9 + $0xd0] sm:$0xff]  ;;  %v1488_v56 = vpack.c.bf16 %v511_v49, %v503_v48  ;;  %v968_v57 = vld [vmem:[#allocation9 + $0xe8] sm:$0xff]  ;;  %v1490_v59 = vpack.c.bf16 %v528_v51, %v520_v50 }
  0xde   : > { %v527_v61 = vld [vmem:[#allocation6 + $0x650] sm:$0xff]  ;;  %v536_v62 = vld [vmem:[#allocation6 + $0x698] sm:$0xff]  ;;  %v1662_v1 = vpack.c.bf16 %v970_v58, %v968_v57  ;;  %v967_v57 = vld [vmem:[#allocation9 + $0xe0] sm:$0xff] }
  0xdf   : > { %1461 = vmatpush1.bf16.msra.mxu1 %v1460_v34  ;;  %v1482_v34 = vpack.c.bf16 %v496_v26, %v488_v25  ;;  %v544_v63 = vld [vmem:[#allocation6 + $0x6d8] sm:$0xff]  ;;  %v535_v5 = vld [vmem:[#allocation6 + $0x690] sm:$0xff] }
  0xe0   : > { %1463 = vmatprep.subr.bf16.mxu1 %v1462_v35  ;;  %1645 = vmatpush1.bf16.msra.mxu0 %v1644_v15  ;;  %v487_v35 = vld [vmem:[#allocation6 + $0x510] sm:$0xff]  ;;  %v1494_v4 = vpack.c.bf16 %v544_v63, %v536_v62  ;;  %v560_v8 = vld [vmem:[#allocation6 + $0x758] sm:$0xff] }
  0xe1   : > { %1647 = vmatprep.subr.bf16.mxu0 %v1646_v16  ;;  %v1484_v44 = vpack.c.bf16 %v495_v36, %v487_v35  ;;  %v543_v6 = vld [vmem:[#allocation6 + $0x6d0] sm:$0xff]  ;;  %v568_v13 = vld [vmem:[#allocation6 + $0x798] sm:$0xff] }
  0xe2   : > { %v1496_v9 = vpack.c.bf16 %v543_v6, %v535_v5  ;;  %v551_v11 = vld [vmem:[#allocation6 + $0x710] sm:$0xff]  ;;  %v576_v14 = vld [vmem:[#allocation6 + $0x7d8] sm:$0xff]  ;;  %v971_v6 = vld [vmem:[#allocation9 + $0x100] sm:$0xff] }
  0xe3   : > { %1465 = vmatpush1.bf16.msra.mxu1 %v1464_v41  ;;  %v1654_v41 = vpack.c.bf16 %v962_v33, %v960_v32  ;;  %v559_v12 = vld [vmem:[#allocation6 + $0x750] sm:$0xff]  ;;  %v1502_v16 = vpack.c.bf16 %v576_v14, %v568_v13  ;;  %v340_v20 = vld [vmem:[#allocation6 + $0x78] sm:$0xff] }
  0xe4   : > { %1467 = vmatprep.subr.bf16.mxu1 %v1466_v43  ;;  %1649 = vmatpush1.bf16.msra.mxu0 %v1648_v27  ;;  %v961_v43 = vld [vmem:[#allocation9 + $0xb0] sm:$0xff]  ;;  %v1500_v15 = vpack.c.bf16 %v559_v12, %v551_v11  ;;  %v567_v17 = vld [vmem:[#allocation6 + $0x790] sm:$0xff] }
  0xe5   : > { %1651 = vmatprep.subr.bf16.mxu0 %v1650_v28  ;;  %v1656_v52 = vpack.c.bf16 %v961_v43, %v959_v42  ;;  %v575_v18 = vld [vmem:[#allocation6 + $0x7d0] sm:$0xff]  ;;  %v348_v25 = vld [vmem:[#allocation6 + $0xb8] sm:$0xff] }
  0xe6   : > { %v1504_v21 = vpack.c.bf16 %v575_v18, %v567_v17  ;;  %v331_v23 = vld [vmem:[#allocation6 + $0x30] sm:$0xff]  ;;  %v356_v26 = vld [vmem:[#allocation6 + $0xf8] sm:$0xff]  ;;  %v975_v18 = vld [vmem:[#allocation9 + $0x120] sm:$0xff] }
  0xe7   : > { %1469 = vmatpush1.bf16.msra.mxu1 %v1468_v54  ;;  %v963_v54 = vld [vmem:[#allocation9 + $0xc0] sm:$0xff]  ;;  %v339_v24 = vld [vmem:[#allocation6 + $0x70] sm:$0xff]  ;;  %v1574_v28 = vpack.c.bf16 %v356_v26, %v348_v25  ;;  %v372_v32 = vld [vmem:[#allocation6 + $0x178] sm:$0xff] }
  0xe8   : > { %1471 = vmatprep.subr.bf16.mxu1 %v1470_v60  ;;  %1653 = vmatpush1.bf16.msra.mxu0 %v1652_v40  ;;  %v519_v60 = vld [vmem:[#allocation6 + $0x610] sm:$0xff]  ;;  %v1660_v0 = vpack.c.bf16 %v965_v55, %v963_v54  ;;  %v1572_v27 = vpack.c.bf16 %v339_v24, %v331_v23  ;;  %v380_v37 = vld [vmem:[#allocation6 + $0x1b8] sm:$0xff] }
  0xe9   : > { %1655 = vmatprep.subr.bf16.mxu0 %v1654_v41  ;;  %v1492_v3 = vpack.c.bf16 %v527_v61, %v519_v60  ;;  %v347_v29 = vld [vmem:[#allocation6 + $0xb0] sm:$0xff]  ;;  %v388_v39 = vld [vmem:[#allocation6 + $0x1f8] sm:$0xff] }
  0xea   : > { %v355_v30 = vld [vmem:[#allocation6 + $0xf0] sm:$0xff]  ;;  %v1582_v41 = vpack.c.bf16 %v388_v39, %v380_v37  ;;  %v404_v45 = vld [vmem:[#allocation6 + $0x278] sm:$0xff] }
  0xeb   : > { %1473 = vmatpush1.bf16.msra.mxu1 %v1472_v7  ;;  %v552_v7 = vld [vmem:[#allocation6 + $0x718] sm:$0xff]  ;;  %v1576_v33 = vpack.c.bf16 %v355_v30, %v347_v29  ;;  %v363_v35 = vld [vmem:[#allocation6 + $0x130] sm:$0xff]  ;;  %v979_v30 = vld [vmem:[#allocation9 + $0x140] sm:$0xff] }
  0xec   : > { %1475 = vmatprep.subr.bf16.mxu1 %v1474_v10  ;;  %1657 = vmatpush1.bf16.msra.mxu0 %v1656_v52  ;;  %v1498_v10 = vpack.c.bf16 %v560_v8, %v552_v7  ;;  %v371_v36 = vld [vmem:[#allocation6 + $0x170] sm:$0xff]  ;;  %v412_v49 = vld [vmem:[#allocation6 + $0x2b8] sm:$0xff] }
  0xed   : > { %1659 = vmatprep.subr.bf16.mxu0 %v1658_v53  ;;  %v1580_v40 = vpack.c.bf16 %v371_v36, %v363_v35  ;;  %v379_v42 = vld [vmem:[#allocation6 + $0x1b0] sm:$0xff]  ;;  %v420_v50 = vld [vmem:[#allocation6 + $0x2f8] sm:$0xff] }
  0xee   : > { %v387_v43 = vld [vmem:[#allocation6 + $0x1f0] sm:$0xff]  ;;  %v1590_v52 = vpack.c.bf16 %v420_v50, %v412_v49  ;;  %v428_v55 = vld [vmem:[#allocation6 + $0x338] sm:$0xff] }
  0xef   : > { %1477 = vmatpush1.bf16.msra.mxu1 %v1476_v19  ;;  %v332_v19 = vld [vmem:[#allocation6 + $0x38] sm:$0xff]  ;;  %v1584_v46 = vpack.c.bf16 %v387_v43, %v379_v42  ;;  %v395_v48 = vld [vmem:[#allocation6 + $0x230] sm:$0xff]  ;;  %v983_v43 = vld [vmem:[#allocation9 + $0x160] sm:$0xff] }
  0xf0   : > { %1479 = vmatprep.subr.bf16.mxu1 %v1478_v22  ;;  %1661 = vmatpush1.bf16.msra.mxu0 %v1660_v0  ;;  %v1570_v22 = vpack.c.bf16 %v340_v20, %v332_v19  ;;  %v411_v53 = vld [vmem:[#allocation6 + $0x2b0] sm:$0xff]  ;;  %v969_v58 = vld [vmem:[#allocation9 + $0xf0] sm:$0xff] }
  0xf1   : > { %1663 = vmatprep.subr.bf16.mxu0 %v1662_v1  ;;  %v419_v54 = vld [vmem:[#allocation6 + $0x2f0] sm:$0xff]  ;;  %v1664_v60 = vpack.c.bf16 %v969_v58, %v967_v57  ;;  %v444_v0 = vld [vmem:[#allocation6 + $0x3b8] sm:$0xff] }
  0xf2   : > { %v427_v62 = vld [vmem:[#allocation6 + $0x330] sm:$0xff]  ;;  %v452_v1 = vld [vmem:[#allocation6 + $0x3f8] sm:$0xff] }
  0xf3   : > { %1481 = vmatpush1.bf16.msra.mxu1 %v1480_v31  ;;  %v364_v31 = vld [vmem:[#allocation6 + $0x138] sm:$0xff]  ;;  %v435_v63 = vld [vmem:[#allocation6 + $0x370] sm:$0xff] }
  0xf4   : > { %1483 = vmatprep.subr.bf16.mxu1 %v1482_v34  ;;  %v1578_v34 = vpack.c.bf16 %v372_v32, %v364_v31  ;;  %1665 = vmatpush1.bf16.msra.mxu0 %v1664_v60  ;;  %v973_v7 = vld [vmem:[#allocation9 + $0x110] sm:$0xff]  ;;  %v1596_v8 = vpack.c.bf16 %v435_v63, %v427_v62  ;;  %v443_v11 = vld [vmem:[#allocation6 + $0x3b0] sm:$0xff] }
  0xf5   : > { %v451_v12 = vld [vmem:[#allocation6 + $0x3f0] sm:$0xff]  ;;  %v460_v13 = vld [vmem:[#allocation6 + $0x438] sm:$0xff] }
  0xf6   : > { %v468_v14 = vld [vmem:[#allocation6 + $0x478] sm:$0xff]  ;;  %v1600_v20 = vpack.c.bf16 %v451_v12, %v443_v11  ;;  %v459_v23 = vld [vmem:[#allocation6 + $0x430] sm:$0xff] }
  0xf7   : > { %1485 = vmatpush1.bf16.msra.mxu1 %v1484_v44  ;;  %v396_v44 = vld [vmem:[#allocation6 + $0x238] sm:$0xff]  ;;  %v467_v24 = vld [vmem:[#allocation6 + $0x470] sm:$0xff] }
  0xf8   : > { %1487 = vmatprep.subr.bf16.mxu1 %v1486_v47  ;;  %v1586_v47 = vpack.c.bf16 %v404_v45, %v396_v44  ;;  %v977_v19 = vld [vmem:[#allocation9 + $0x130] sm:$0xff]  ;;  %v1604_v32 = vpack.c.bf16 %v467_v24, %v459_v23  ;;  %v475_v35 = vld [vmem:[#allocation6 + $0x4b0] sm:$0xff] }
  0xf9   : > { %v476_v25 = vld [vmem:[#allocation6 + $0x4b8] sm:$0xff]  ;;  %v483_v36 = vld [vmem:[#allocation6 + $0x4f0] sm:$0xff] }
  0xfa   : > { %v484_v26 = vld [vmem:[#allocation6 + $0x4f8] sm:$0xff]  ;;  %v1608_v45 = vpack.c.bf16 %v483_v36, %v475_v35  ;;  %v515_v60 = vld [vmem:[#allocation6 + $0x5f0] sm:$0xff] }
  0xfb   : > { %1489 = vmatpush1.bf16.msra.mxu1 %v1488_v56  ;;  %v436_v56 = vld [vmem:[#allocation6 + $0x378] sm:$0xff]  ;;  %v992_v63 = vld [vmem:[#allocation9 + $0x1a8] sm:$0xff] }
  0xfc   : > { %1491 = vmatprep.subr.bf16.mxu1 %v1490_v59  ;;  %v1592_v59 = vpack.c.bf16 %v419_v54, %v411_v53  ;;  %v1594_v61 = vpack.c.bf16 %v436_v56, %v428_v55  ;;  %v981_v31 = vld [vmem:[#allocation9 + $0x150] sm:$0xff]  ;;  %v987_v54 = vld [vmem:[#allocation9 + $0x180] sm:$0xff]  ;;  %v996_v12 = vld [vmem:[#allocation9 + $0x1c8] sm:$0xff] }
  0xfd   : > { %v492_v37 = vld [vmem:[#allocation6 + $0x538] sm:$0xff]  ;;  %v1000_v24 = vld [vmem:[#allocation9 + $0x1e8] sm:$0xff] }
  0xfe   : > { %v500_v39 = vld [vmem:[#allocation6 + $0x578] sm:$0xff] }
  0xff   : > { %1493 = vmatpush1.bf16.msra.mxu1 %v1492_v3  ;;  %v972_v3 = vld [vmem:[#allocation9 + $0x108] sm:$0xff]  ;;  %v985_v44 = vld [vmem:[#allocation9 + $0x170] sm:$0xff] }
 0x100   : > { %1495 = vmatprep.subr.bf16.mxu1 %v1494_v4  ;;  %v974_v4 = vld [vmem:[#allocation9 + $0x118] sm:$0xff]  ;;  %v508_v49 = vld [vmem:[#allocation6 + $0x5b8] sm:$0xff] }
 0x101   : > { %v1666_v5 = vpack.c.bf16 %v974_v4, %v972_v3  ;;  %v516_v50 = vld [vmem:[#allocation6 + $0x5f8] sm:$0xff]  ;;  %v991_v3 = vld [vmem:[#allocation9 + $0x1a0] sm:$0xff] }
 0x102   : > { %v989_v55 = vld [vmem:[#allocation9 + $0x190] sm:$0xff]  ;;  %v1614_v58 = vpack.c.bf16 %v516_v50, %v508_v49 }
 0x103   : > { %1497 = vmatpush1.bf16.msra.mxu1 %v1496_v9  ;;  %v1668_v9 = vpack.c.bf16 %v973_v7, %v971_v6  ;;  %1667 = vmatprep.subr.bf16.mxu0 %v1666_v5  ;;  %v1684_v57 = vpack.c.bf16 %v989_v55, %v987_v54  ;;  %v532_v62 = vld [vmem:[#allocation6 + $0x678] sm:$0xff] }
 0x104   : > { %1499 = vmatprep.subr.bf16.mxu1 %v1498_v10  ;;  %v1598_v10 = vpack.c.bf16 %v452_v1, %v444_v0  ;;  %v994_v0 = vld [vmem:[#allocation9 + $0x1b8] sm:$0xff]  ;;  %v993_v4 = vld [vmem:[#allocation9 + $0x1b0] sm:$0xff] }
 0x105   : > { %1669 = vmatpush1.bf16.msra.mxu0 %v1668_v9  ;;  %v1686_v1 = vpack.c.bf16 %v994_v0, %v992_v63  ;;  %v1688_v6 = vpack.c.bf16 %v993_v4, %v991_v3  ;;  %v531_v9 = vld [vmem:[#allocation6 + $0x670] sm:$0xff]  ;;  %v548_v11 = vld [vmem:[#allocation6 + $0x6f8] sm:$0xff] }
 0x106   : > { %v564_v23 = vld [vmem:[#allocation6 + $0x778] sm:$0xff] }
 0x107   : > { %1501 = vmatpush1.bf16.msra.mxu1 %v1500_v15  ;;  %v976_v15 = vld [vmem:[#allocation9 + $0x128] sm:$0xff]  ;;  %v580_v35 = vld [vmem:[#allocation6 + $0x7f8] sm:$0xff] }
 0x108   : > { %1503 = vmatprep.subr.bf16.mxu1 %v1502_v16  ;;  %v978_v16 = vld [vmem:[#allocation9 + $0x138] sm:$0xff] }
 0x109   : > { %v1670_v17 = vpack.c.bf16 %v978_v16, %v976_v15  ;;  %v995_v15 = vld [vmem:[#allocation9 + $0x1c0] sm:$0xff]  ;;  %v997_v16 = vld [vmem:[#allocation9 + $0x1d0] sm:$0xff] }
 0x10b   : > { %1505 = vmatpush1.bf16.msra.mxu1 %v1504_v21  ;;  %v1672_v21 = vpack.c.bf16 %v977_v19, %v975_v18  ;;  %1671 = vmatprep.subr.bf16.mxu0 %v1670_v17  ;;  %v1692_v18 = vpack.c.bf16 %v997_v16, %v995_v15 }
 0x10c   : > { %1571 = vmatprep.subr.bf16.mxu1 %v1570_v22  ;;  %v1602_v22 = vpack.c.bf16 %v468_v14, %v460_v13  ;;  %v998_v13 = vld [vmem:[#allocation9 + $0x1d8] sm:$0xff] }
 0x10d   : > { %1673 = vmatpush1.bf16.msra.mxu0 %v1672_v21  ;;  %v1690_v14 = vpack.c.bf16 %v998_v13, %v996_v12  ;;  %v547_v21 = vld [vmem:[#allocation6 + $0x6f0] sm:$0xff]  ;;  %v1010_v12 = vld [vmem:[#allocation9 + $0x238] sm:$0xff] }
 0x10e   : > { %759 = vmatmul.mubr.f32.vlgmr.msra.gmra.mrb[2].mxu1 %v2356_v2 }
 0x10f   : > { %1573 = vmatpush1.bf16.msra.mxu1 %v1572_v27  ;;  %900 = vmatprep.mubr.f32.mxu1 %v2351_v38  ;;  %v403_v38 = vld [vmem:[#allocation6 + $0x270] sm:$0xff] }
 0x110   : > { %1575 = vmatprep.subr.bf16.mxu1 %v1574_v28  ;;  %v1588_v51 = vpack.c.bf16 %v403_v38, %v395_v48  ;;  %v980_v27 = vld [vmem:[#allocation9 + $0x148] sm:$0xff]  ;;  %v982_v28 = vld [vmem:[#allocation9 + $0x158] sm:$0xff] }
 0x111   : > { %v1674_v29 = vpack.c.bf16 %v982_v28, %v980_v27  ;;  %v491_v48 = vld [vmem:[#allocation6 + $0x530] sm:$0xff]  ;;  %v999_v27 = vld [vmem:[#allocation9 + $0x1e0] sm:$0xff]  ;;  %v1001_v28 = vld [vmem:[#allocation9 + $0x1f0] sm:$0xff] }
 0x112   : > { %v499_v38 = vld [vmem:[#allocation6 + $0x570] sm:$0xff] }
 0x113   : > { %1577 = vmatpush1.bf16.msra.mxu1 %v1576_v33  ;;  %v1676_v33 = vpack.c.bf16 %v981_v31, %v979_v30  ;;  %1675 = vmatprep.subr.bf16.mxu0 %v1674_v29  ;;  %v1612_v56 = vpack.c.bf16 %v499_v38, %v491_v48  ;;  %v1696_v30 = vpack.c.bf16 %v1001_v28, %v999_v27  ;;  %v2367_v48 = vld [vmem:[#allocation8] sm:$0xff] }
 0x114   : > { %1579 = vmatprep.subr.bf16.mxu1 %v1578_v34  ;;  %v1606_v34 = vpack.c.bf16 %v484_v26, %v476_v25  ;;  %v1002_v25 = vld [vmem:[#allocation9 + $0x1f8] sm:$0xff] }
 0x115   : > { %1677 = vmatpush1.bf16.msra.mxu0 %v1676_v33  ;;  %v1694_v26 = vpack.c.bf16 %v1002_v25, %v1000_v24  ;;  %v563_v33 = vld [vmem:[#allocation6 + $0x770] sm:$0xff]  ;;  %v1013_v24 = vld [vmem:[#allocation9 + $0x250] sm:$0xff] }
 0x116   : > { %v1016_v25 = vld [vmem:[#allocation9 + $0x268] sm:$0xff] }
 0x117   : > { %1581 = vmatpush1.bf16.msra.mxu1 %v1580_v40  ;;  %v984_v40 = vld [vmem:[#allocation9 + $0x168] sm:$0xff] }
 0x118   : > { %1583 = vmatprep.subr.bf16.mxu1 %v1582_v41  ;;  %v986_v41 = vld [vmem:[#allocation9 + $0x178] sm:$0xff] }
 0x119   : > { %v1678_v42 = vpack.c.bf16 %v986_v41, %v984_v40  ;;  %v579_v40 = vld [vmem:[#allocation6 + $0x7f0] sm:$0xff] }
 0x11b   : > { %1585 = vmatpush1.bf16.msra.mxu1 %v1584_v46  ;;  %v1680_v46 = vpack.c.bf16 %v985_v44, %v983_v43  ;;  %1679 = vmatprep.subr.bf16.mxu0 %v1678_v42  ;;  %v1004_v42 = vld [vmem:[#allocation9 + $0x208] sm:$0xff]  ;;  %v1006_v43 = vld [vmem:[#allocation9 + $0x218] sm:$0xff] }
 0x11c   : > { %1587 = vmatprep.subr.bf16.mxu1 %v1586_v47  ;;  %v1610_v47 = vpack.c.bf16 %v500_v39, %v492_v37  ;;  %v571_v39 = vld [vmem:[#allocation6 + $0x7b0] sm:$0xff]  ;;  %v1698_v44 = vpack.c.bf16 %v1006_v43, %v1004_v42  ;;  %v1023_v42 = vld [vmem:[#allocation9 + $0x2a0] sm:$0xff]  ;;  %v1025_v43 = vld [vmem:[#allocation9 + $0x2b0] sm:$0xff] }
 0x11d   : > { %1681 = vmatpush1.bf16.msra.mxu0 %v1680_v46  ;;  %v1632_v41 = vpack.c.bf16 %v579_v40, %v571_v39  ;;  %v1026_v39 = vld [vmem:[#allocation9 + $0x2b8] sm:$0xff] }
 0x11f   : > { %1589 = vmatpush1.bf16.msra.mxu1 %v1588_v51  ;;  %v988_v51 = vld [vmem:[#allocation9 + $0x188] sm:$0xff] }
 0x120   : > { %1591 = vmatprep.subr.bf16.mxu1 %v1590_v52  ;;  %v990_v52 = vld [vmem:[#allocation9 + $0x198] sm:$0xff] }
 0x121   : > { %v1682_v53 = vpack.c.bf16 %v990_v52, %v988_v51 }
 0x123   : > { %1593 = vmatpush1.bf16.msra.mxu1 %v1592_v59  ;;  %v507_v59 = vld [vmem:[#allocation6 + $0x5b0] sm:$0xff]  ;;  %1683 = vmatprep.subr.bf16.mxu0 %v1682_v53 }
 0x124   : > { %1595 = vmatprep.subr.bf16.mxu1 %v1594_v61  ;;  %v524_v61 = vld [vmem:[#allocation6 + $0x638] sm:$0xff]  ;;  %1685 = vmatpush1.bf16.msra.mxu0 %v1684_v57  ;;  %v1616_v5 = vpack.c.bf16 %v515_v60, %v507_v59 }
 0x125   : > { %v1618_v7 = vpack.c.bf16 %v532_v62, %v524_v61  ;;  %1687 = vmatprep.subr.bf16.mxu0 %v1686_v1 }
 0x127   : > { %1597 = vmatpush1.bf16.msra.mxu1 %v1596_v8  ;;  %v523_v8 = vld [vmem:[#allocation6 + $0x630] sm:$0xff] }
 0x128   : > { %1599 = vmatprep.subr.bf16.mxu1 %v1598_v10  ;;  %v540_v10 = vld [vmem:[#allocation6 + $0x6b8] sm:$0xff]  ;;  %1689 = vmatpush1.bf16.msra.mxu0 %v1688_v6  ;;  %v1620_v17 = vpack.c.bf16 %v531_v9, %v523_v8  ;;  %v1003_v8 = vld [vmem:[#allocation9 + $0x200] sm:$0xff] }
 0x129   : > { %v1622_v19 = vpack.c.bf16 %v548_v11, %v540_v10  ;;  %1691 = vmatprep.subr.bf16.mxu0 %v1690_v14  ;;  %v1005_v9 = vld [vmem:[#allocation9 + $0x210] sm:$0xff]  ;;  %v1008_v11 = vld [vmem:[#allocation9 + $0x228] sm:$0xff] }
 0x12a   : > { %v1700_v15 = vpack.c.bf16 %v1005_v9, %v1003_v8  ;;  %v1702_v16 = vpack.c.bf16 %v1010_v12, %v1008_v11  ;;  %v1041_v8 = vld [vmem:[#allocation9 + $0x330] sm:$0xff]  ;;  %v1044_v9 = vld [vmem:[#allocation9 + $0x348] sm:$0xff] }
 0x12b   : > { %1601 = vmatpush1.bf16.msra.mxu1 %v1600_v20  ;;  %v539_v20 = vld [vmem:[#allocation6 + $0x6b0] sm:$0xff] }
 0x12c   : > { %1603 = vmatprep.subr.bf16.mxu1 %v1602_v22  ;;  %v556_v22 = vld [vmem:[#allocation6 + $0x738] sm:$0xff]  ;;  %1693 = vmatpush1.bf16.msra.mxu0 %v1692_v18  ;;  %v1624_v29 = vpack.c.bf16 %v547_v21, %v539_v20  ;;  %v1014_v20 = vld [vmem:[#allocation9 + $0x258] sm:$0xff] }
 0x12d   : > { %v1626_v31 = vpack.c.bf16 %v564_v23, %v556_v22  ;;  %1695 = vmatprep.subr.bf16.mxu0 %v1694_v26  ;;  %v1009_v18 = vld [vmem:[#allocation9 + $0x230] sm:$0xff]  ;;  %v1011_v23 = vld [vmem:[#allocation9 + $0x240] sm:$0xff]  ;;  %v1018_v26 = vld [vmem:[#allocation9 + $0x278] sm:$0xff] }
 0x12e   : > { %v1708_v27 = vpack.c.bf16 %v1013_v24, %v1011_v23  ;;  %v1710_v28 = vpack.c.bf16 %v1018_v26, %v1016_v25  ;;  %v1051_v25 = vld [vmem:[#allocation9 + $0x380] sm:$0xff]  ;;  %v1053_v26 = vld [vmem:[#allocation9 + $0x390] sm:$0xff] }
 0x12f   : > { %1605 = vmatpush1.bf16.msra.mxu1 %v1604_v32  ;;  %v555_v32 = vld [vmem:[#allocation6 + $0x730] sm:$0xff] }
 0x130   : > { %1607 = vmatprep.subr.bf16.mxu1 %v1606_v34  ;;  %v572_v34 = vld [vmem:[#allocation6 + $0x7b8] sm:$0xff]  ;;  %1697 = vmatpush1.bf16.msra.mxu0 %v1696_v30  ;;  %v1628_v36 = vpack.c.bf16 %v563_v33, %v555_v32  ;;  %v1022_v32 = vld [vmem:[#allocation9 + $0x298] sm:$0xff] }
 0x131   : > { %v1630_v37 = vpack.c.bf16 %v580_v35, %v572_v34  ;;  %1699 = vmatprep.subr.bf16.mxu0 %v1698_v44  ;;  %v1017_v30 = vld [vmem:[#allocation9 + $0x270] sm:$0xff]  ;;  %v1019_v35 = vld [vmem:[#allocation9 + $0x280] sm:$0xff]  ;;  %v1028_v44 = vld [vmem:[#allocation9 + $0x2c8] sm:$0xff] }
 0x133   : > { %1609 = vmatpush1.bf16.msra.mxu1 %v1608_v45  ;;  %v583_v45 = vlaneseq }
 0x134   : > { %1611 = vmatprep.subr.bf16.mxu1 %v1610_v47 }
 0x135   : > { %v2364_v46 = vshrl.u32 %v583_v45, 7  ;;  %v1030_v45 = vld [vmem:[#allocation9 + $0x2d8] sm:$0xff] }
 0x137   : > { %1613 = vmatpush1.bf16.msra.mxu1 %v1612_v56  ;;  %v585_v47 = vsub.s32 0, %v2364_v46  ;;  %v589_v38 = vsub.s32 1, %v2364_v46  ;;  %v601_v62 = vsub.s32 4, %v2364_v46  ;;  %v605_v63 = vsub.s32 5, %v2364_v46 }
 0x138   : > { %1615 = vmatprep.subr.bf16.mxu1 %v1614_v58 }
 0x139   : > { %v586_v49 = vrot.slane %v2367_v48, %v585_v47  ;;  %v602_v0 = vrot.slane %v2367_v48, %v601_v62  ;;  %v606_v1 = vrot.slane %v2367_v48, %v605_v63  ;;  %v1035_v62 = vld [vmem:[#allocation9 + $0x300] sm:$0xff]  ;;  %v1037_v63 = vld [vmem:[#allocation9 + $0x310] sm:$0xff] }
 0x13b   : > { %1617 = vmatpush1.bf16.msra.mxu1 %v1616_v5 }
 0x13c   : > { %1619 = vmatprep.subr.bf16.mxu1 %v1618_v7 }
 0x13f   : > { %1621 = vmatpush1.bf16.msra.mxu1 %v1620_v17  ;;  %v1007_v17 = vld [vmem:[#allocation9 + $0x220] sm:$0xff] }
 0x140   : > { %1623 = vmatprep.subr.bf16.mxu1 %v1622_v19  ;;  %v1012_v19 = vld [vmem:[#allocation9 + $0x248] sm:$0xff]  ;;  %v1704_v21 = vpack.c.bf16 %v1009_v18, %v1007_v17 }
 0x141   : > { %v1706_v22 = vpack.c.bf16 %v1014_v20, %v1012_v19  ;;  %v1047_v19 = vld [vmem:[#allocation9 + $0x360] sm:$0xff]  ;;  %v1049_v20 = vld [vmem:[#allocation9 + $0x370] sm:$0xff] }
 0x142   : > { %v1744_v23 = vpack.c.bf16 %v1049_v20, %v1047_v19 }
 0x143   : > { %1625 = vmatpush1.bf16.msra.mxu1 %v1624_v29  ;;  %v1015_v29 = vld [vmem:[#allocation9 + $0x260] sm:$0xff] }
 0x144   : > { %1627 = vmatprep.subr.bf16.mxu1 %v1626_v31  ;;  %v1020_v31 = vld [vmem:[#allocation9 + $0x288] sm:$0xff]  ;;  %v1712_v33 = vpack.c.bf16 %v1017_v30, %v1015_v29  ;;  %v1748_v29 = vpack.c.bf16 %v1053_v26, %v1051_v25 }
 0x145   : > { %v1714_v34 = vpack.c.bf16 %v1022_v32, %v1020_v31  ;;  %v1055_v31 = vld [vmem:[#allocation9 + $0x3a0] sm:$0xff]  ;;  %v1057_v32 = vld [vmem:[#allocation9 + $0x3b0] sm:$0xff] }
 0x147   : > { %1629 = vmatpush1.bf16.msra.mxu1 %v1628_v36  ;;  %v1021_v36 = vld [vmem:[#allocation9 + $0x290] sm:$0xff] }
 0x148   : > { %1631 = vmatprep.subr.bf16.mxu1 %v1630_v37  ;;  %v1024_v37 = vld [vmem:[#allocation9 + $0x2a8] sm:$0xff]  ;;  %v1716_v40 = vpack.c.bf16 %v1021_v36, %v1019_v35  ;;  %v593_v35 = vsub.s32 2, %v2364_v46  ;;  %v597_v36 = vsub.s32 3, %v2364_v46 }
 0x14b   : > { %1633 = vmatpush1.bf16.msra.mxu1 %v1632_v41  ;;  %v1718_v41 = vpack.c.bf16 %v1026_v39, %v1024_v37  ;;  %v1752_v37 = vpack.c.bf16 %v1057_v32, %v1055_v31 }
 0x14e   : > { %901 = vmatmul.mubr.f32.vlgmr.msra.gmra.mrb[4].mxu1 %v2356_v2  ;;  %v590_v2 = vrot.slane %v2367_v48, %v589_v38 }
 0x1a1   : > { %v689_v50 = vpop.f32.mrb[0].mxu1 }
 0x1a2   : > { %v690_v51 = vadd.f32 %v689_v50, %v586_v49  ;;  %v691_v52 = vpop.f32.mrb[1].mxu1  ;;  %v1720_v49 = vpack.c.bf16 %v1025_v43, %v1023_v42  ;;  %v1027_v50 = vld [vmem:[#allocation9 + $0x2c0] sm:$0xff]  ;;  %v1064_v42 = vld [vmem:[#allocation9 + $0x3e8] sm:$0xff]  ;;  %v1066_v43 = vld [vmem:[#allocation9 + $0x3f8] sm:$0xff] }
 0x1a3   : > { %v692_v53 = vadd.f32 %v691_v52, %v590_v2  ;;  %v1722_v2 = vpack.c.bf16 %v1030_v45, %v1028_v44  ;;  %v1032_v52 = vld [vmem:[#allocation9 + $0x2e8] sm:$0xff]  ;;  %v594_v44 = vrot.slane %v2367_v48, %v593_v35  ;;  %v598_v45 = vrot.slane %v2367_v48, %v597_v36 }
 0x1a4   : > { %v1367_v54 = vmul.f32 -1.442695, %v690_v51 }
 0x1a5   : > { %v1368_v55 = vmul.f32 -1.442695, %v692_v53 }
 0x1a6   : > { %1863 = vpow2.f32 %v1367_v54 }
 0x1a7   : > { %1865 = vpow2.f32 %v1368_v55 }
 0x1aa   : > { %v831_v56 = vpop.f32.mrb[0].mxu0 }
 0x1ab   : > { %v833_v57 = vpop.f32.mrb[1].mxu0  ;;  %v832_v3 = vadd.f32 %v831_v56, %v602_v0  ;;  %v1031_v56 = vld [vmem:[#allocation9 + $0x2e0] sm:$0xff]  ;;  %v1040_v0 = vld [vmem:[#allocation9 + $0x328] sm:$0xff] }
 0x1ac   : > { %v834_v5 = vadd.f32 %v833_v57, %v606_v1  ;;  %v1033_v57 = vld [vmem:[#allocation9 + $0x2f0] sm:$0xff]  ;;  %v1042_v1 = vld [vmem:[#allocation9 + $0x338] sm:$0xff] }
 0x1b0   : > { %v1864_v58 = vpop.eup %1863 }
 0x1b1   : > { %v1866_v59 = vpop.eup %1865  ;;  %v919_v60 = vadd.f32 1.0, %v1864_v58  ;;  %v1036_v58 = vld [vmem:[#allocation9 + $0x308] sm:$0xff] }
 0x1b2   : > { %v920_v61 = vadd.f32 1.0, %v1866_v59  ;;  %v1038_v59 = vld [vmem:[#allocation9 + $0x318] sm:$0xff] }
 0x1b3   : > { %1867 = vrcp.f32 %v919_v60  ;;  %v1728_v60 = vpack.c.bf16 %v1033_v57, %v1031_v56 }
 0x1b4   : > { %1869 = vrcp.f32 %v920_v61  ;;  %v1730_v61 = vpack.c.bf16 %v1038_v59, %v1036_v58 }
 0x1bd   : > { %v1868_v4 = vpop.eup %1867 }
 0x1be   : > { %v1870_v6 = vpop.eup %1869  ;;  %v931_v7 = vmul.f32 %v1868_v4, %v690_v51  ;;  %v1029_v51 = vld [vmem:[#allocation9 + $0x2d0] sm:$0xff]  ;;  %v1732_v4 = vpack.c.bf16 %v1037_v63, %v1035_v62  ;;  %v613_v62 = vsub.s32 7, %v2364_v46 }
 0x1bf   : > { %v932_v10 = vmul.f32 %v1870_v6, %v692_v53  ;;  %v1034_v53 = vld [vmem:[#allocation9 + $0x2f8] sm:$0xff]  ;;  %v1724_v54 = vpack.c.bf16 %v1029_v51, %v1027_v50  ;;  %v1734_v6 = vpack.c.bf16 %v1042_v1, %v1040_v0  ;;  %v1063_v50 = vld [vmem:[#allocation9 + $0x3e0] sm:$0xff]  ;;  %v1065_v51 = vld [vmem:[#allocation9 + $0x3f0] sm:$0xff] }
 0x1c0   : > { %v935_v13 = vmul.f32 %v931_v7, %v832_v3  ;;  %v1726_v55 = vpack.c.bf16 %v1034_v53, %v1032_v52  ;;  %v1039_v7 = vld [vmem:[#allocation9 + $0x320] sm:$0xff]  ;;  %v614_v1 = vrot.slane %v2367_v48, %v613_v62 }
 0x1c1   : > { %v936_v14 = vmul.f32 %v932_v10, %v834_v5  ;;  %v1046_v10 = vld [vmem:[#allocation9 + $0x358] sm:$0xff]  ;;  %v1736_v11 = vpack.c.bf16 %v1041_v8, %v1039_v7 }
 0x1c2   : > { %v1738_v12 = vpack.c.bf16 %v1046_v10, %v1044_v9 }
 0x1c3   : > { %1143 = vmatprep.mubr.f32.mxu0 %v936_v14  ;;  %v1045_v14 = vld [vmem:[#allocation9 + $0x350] sm:$0xff] }
 0x1c4   : > { %1144 = vmatmul.mubr.f32.vlgmr.msra.gmra.mrb[2].mxu0 %v935_v13  ;;  %v1043_v13 = vld [vmem:[#allocation9 + $0x340] sm:$0xff] }
 0x1c5   : > { %1701 = vmatpush1.bf16.msra.mxu0 %v1700_v15  ;;  %v1048_v15 = vld [vmem:[#allocation9 + $0x368] sm:$0xff]  ;;  %v1740_v17 = vpack.c.bf16 %v1045_v14, %v1043_v13 }
 0x1c6   : > { %1703 = vmatprep.subr.bf16.mxu0 %v1702_v16  ;;  %v1050_v16 = vld [vmem:[#allocation9 + $0x378] sm:$0xff] }
 0x1c7   : > { %v1742_v18 = vpack.c.bf16 %v1050_v16, %v1048_v15 }
 0x1c9   : > { %1705 = vmatpush1.bf16.msra.mxu0 %v1704_v21  ;;  %v1052_v21 = vld [vmem:[#allocation9 + $0x388] sm:$0xff] }
 0x1ca   : > { %1707 = vmatprep.subr.bf16.mxu0 %v1706_v22  ;;  %v1054_v22 = vld [vmem:[#allocation9 + $0x398] sm:$0xff] }
 0x1cb   : > { %v1746_v24 = vpack.c.bf16 %v1054_v22, %v1052_v21 }
 0x1cd   : > { %1709 = vmatpush1.bf16.msra.mxu0 %v1708_v27  ;;  %v1056_v27 = vld [vmem:[#allocation9 + $0x3a8] sm:$0xff] }
 0x1ce   : > { %1711 = vmatprep.subr.bf16.mxu0 %v1710_v28  ;;  %v1058_v28 = vld [vmem:[#allocation9 + $0x3b8] sm:$0xff] }
 0x1cf   : > { %v1750_v30 = vpack.c.bf16 %v1058_v28, %v1056_v27 }
 0x1d1   : > { %1713 = vmatpush1.bf16.msra.mxu0 %v1712_v33  ;;  %v1060_v33 = vld [vmem:[#allocation9 + $0x3c8] sm:$0xff] }
 0x1d2   : > { %1715 = vmatprep.subr.bf16.mxu0 %v1714_v34  ;;  %v1062_v34 = vld [vmem:[#allocation9 + $0x3d8] sm:$0xff] }
 0x1d3   : > { %v1754_v39 = vpack.c.bf16 %v1062_v34, %v1060_v33 }
 0x1d5   : > { %1717 = vmatpush1.bf16.msra.mxu0 %v1716_v40  ;;  %v1059_v40 = vld [vmem:[#allocation9 + $0x3c0] sm:$0xff] }
 0x1d6   : > { %1719 = vmatprep.subr.bf16.mxu0 %v1718_v41  ;;  %v1061_v41 = vld [vmem:[#allocation9 + $0x3d0] sm:$0xff] }
 0x1d9   : > { %1721 = vmatpush1.bf16.msra.mxu0 %v1720_v49  ;;  %v1756_v49 = vpack.c.bf16 %v1061_v41, %v1059_v40 }
 0x1da   : > { %1723 = vmatprep.subr.bf16.mxu0 %v1722_v2  ;;  %v1758_v2 = vpack.c.bf16 %v1066_v43, %v1064_v42 }
 0x1dd   : > { %1725 = vmatpush1.bf16.msra.mxu0 %v1724_v54  ;;  %v1760_v54 = vpack.c.bf16 %v1065_v51, %v1063_v50 }
 0x1de   : > { %1727 = vmatprep.subr.bf16.mxu0 %v1726_v55 }
 0x1e1   : > { %v760_v3 = vpop.f32.mrb[2].mxu1  ;;  %1729 = vmatpush1.bf16.msra.mxu0 %v1728_v60 }
 0x1e2   : > { %v762_v5 = vpop.f32.mrb[3].mxu1  ;;  %1731 = vmatprep.subr.bf16.mxu0 %v1730_v61  ;;  %v761_v52 = vadd.f32 %v760_v3, %v594_v44  ;;  %v609_v61 = vsub.s32 6, %v2364_v46 }
 0x1e3   : > { %v763_v53 = vadd.f32 %v762_v5, %v598_v45 }
 0x1e4   : > { %v1369_v55 = vmul.f32 -1.442695, %v761_v52  ;;  %v610_v63 = vrot.slane %v2367_v48, %v609_v61 }
 0x1e5   : > { %1733 = vmatpush1.bf16.msra.mxu0 %v1732_v4  ;;  %v1370_v56 = vmul.f32 -1.442695, %v763_v53 }
 0x1e6   : > { %1735 = vmatprep.subr.bf16.mxu0 %v1734_v6  ;;  %1871 = vpow2.f32 %v1369_v55 }
 0x1e7   : > { %1873 = vpow2.f32 %v1370_v56 }
 0x1e9   : > { %1737 = vmatpush1.bf16.msra.mxu0 %v1736_v11 }
 0x1ea   : > { %1739 = vmatprep.subr.bf16.mxu0 %v1738_v12  ;;  %v1067_v12 = vld [vmem:[%s2454_s4] sm:$0x3] }
 0x1eb   : > { %v1072_v48 = vrot.slane %v1067_v12, %v585_v47  ;;  %v1076_v13 = vrot.slane %v1067_v12, %v589_v38 }
 0x1ed   : > { %1741 = vmatpush1.bf16.msra.mxu0 %v1740_v17 }
 0x1ee   : > { %1743 = vmatprep.subr.bf16.mxu0 %v1742_v18 }
 0x1f0   : > { %v1872_v57 = vpop.eup %1871 }
 0x1f1   : > { %1745 = vmatpush1.bf16.msra.mxu0 %v1744_v23  ;;  %v1874_v58 = vpop.eup %1873  ;;  %v921_v59 = vadd.f32 1.0, %v1872_v57 }
 0x1f2   : > { %1747 = vmatprep.subr.bf16.mxu0 %v1746_v24  ;;  %v922_v60 = vadd.f32 1.0, %v1874_v58 }
 0x1f3   : > { %1875 = vrcp.f32 %v921_v59 }
 0x1f4   : > { %1877 = vrcp.f32 %v922_v60 }
 0x1f5   : > { %1749 = vmatpush1.bf16.msra.mxu0 %v1748_v29 }
 0x1f6   : > { %1751 = vmatprep.subr.bf16.mxu0 %v1750_v30 }
 0x1f9   : > { %1753 = vmatpush1.bf16.msra.mxu0 %v1752_v37 }
 0x1fa   : > { %1755 = vmatprep.subr.bf16.mxu0 %v1754_v39 }
 0x1fd   : > { %1757 = vmatpush1.bf16.msra.mxu0 %v1756_v49  ;;  %v1876_v0 = vpop.eup %1875 }
 0x1fe   : > { %1759 = vmatprep.subr.bf16.mxu0 %v1758_v2  ;;  %v1878_v3 = vpop.eup %1877  ;;  %v933_v5 = vmul.f32 %v1876_v0, %v761_v52 }
 0x1ff   : > { %v934_v8 = vmul.f32 %v1878_v3, %v763_v53 }
 0x201   : > { %1761 = vmatpush1.bf16.msra.mxu0 %v1760_v54 }
 0x221   : > { %v902_v4 = vpop.f32.mrb[4].mxu1 }
 0x222   : > { %v903_v6 = vadd.f32 %v902_v4, %v610_v63  ;;  %v904_v7 = vpop.f32.mrb[5].mxu1 }
 0x223   : > { %v905_v9 = vadd.f32 %v904_v7, %v614_v1 }
 0x224   : > { %v937_v10 = vmul.f32 %v933_v5, %v903_v6 }
 0x225   : > { %v938_v11 = vmul.f32 %v934_v8, %v905_v9 }
 0x227   : > { %1214 = vmatprep.mubr.f32.mxu0 %v938_v11 }
 0x228   : > { %1215 = vmatmul.mubr.f32.vlgmr.msra.gmra.mrb[2].mxu0 %v937_v10 }
 0x2fb   : > { %v1216_v14 = vpop.f32.mrb[2].mxu0 }
 0x2fc   : > { %v1762_v15 = vadd.f32 %v1216_v14, %v1072_v48  ;;  %v1218_v16 = vpop.f32.mrb[3].mxu0 }
 0x2fd   : > { %v1763_v17 = vadd.f32 %v1218_v16, %v1076_v13 }
 0x2fe   : > { %1221 = vst [vmem:[%s319_s27] sm:$0xff] %v1762_v15 }
 0x2ff   : > { %1222 = vst [vmem:[%s319_s27 + $0x8] sm:$0xff] %v1763_v17 }
 0x300   : > { %2006 = shalt.err (!%p2003_p0)
}
 0x301   : > { %s2007_s25 = scalar_lea.hbm %s2401_s12, 256  ;;  %s2011_s18 = scalar_lea.hbm %s2455_s5, 512 }
 0x302   : > { %p2008_p4 = scmp.ne.s32.totalorder %s2401_s12, %s2007_s25  ;;  %p2012_p1 = scmp.lt.u32.totalorder %s2401_s12, %s2455_s5 }
 0x303   : > { %p2013_p12 = scmp.lt.u32.totalorder %s2011_s18, %s2007_s25  ;;  %p2015_p13 = scmp.lt.u32.totalorder %s2007_s25, %s2401_s12 }
 0x304   : > { %p2009_p2 = pnand %p2008_p4, %p2275_p10 }
 0x305   : > { %p2014_p11 = por %p2013_p12, %p2012_p1 }
 0x306   : > { %p2010_p8 = pneg %p2009_p2 }
 0x307   : > { %p2016_p6 = por %p2015_p13, %p2014_p11 }
 0x309   : > { %p2017_p3 = pnand %p2016_p6, %p2010_p8 }
 0x30b   : > { %2020 = shalt.err (!%p2017_p3)
}
 0x30c   : > { %1780 = dma.vmem_to_hbm [thread:$0]  (%p2275_p10), %s2403_s6, 256, %s2401_s12, %s1224_s21  }
 0x30d PF: > { %s2477_s28 = sld [smem:[#allocation16_spill]]  ;;  %s2478_s30 = sld [smem:[#allocation17_spill]] }
 0x30e   : > { %p2480_p7 = scmp.ge.s32.totalorder %s2083_s23, 2 }
 0x313   : > { %s1250_s27 = sand.u32 1, %s2477_s28   ;;  %p2479_p5 = scmp.ne.s32.totalorder %s2478_s30, 0 }
 0x314   : > { %s1251_s10 = scalar_lea.sflag [#allocation5], %s1250_s27 }
 0x315   : > { %p1797_p9 = pnand %p2480_p7, %p2479_p5 }
 0x317   : > { %2058 = dma.done.wait (!%p1797_p9), %s1251_s10, 256  }
 0x318   : > { %2060 = vsyncadd (!%p1797_p9), %s1251_s10, 4294967040  ;;  %s23_s23 = sadd.s32 1, %s2083_s23   ;;  %s2481_s18 = smov %s2067_s19 }
 0x319   : > { %p20_p0 = scmp.ge.s32.totalorder %s23_s23, 4   ;;  %s2482_s19 = smov %s2071_s20 }
 0x31a   : > { %s2483_s20 = smov %s2287_s15  ;;  %s2484_s21 = smov %s2079_s22 }
 0x31b   : > { %s2485_s22 = smov %s2487_s29  ;;  %22 = sbr.rel (!%p20_p0) target bundleno = 8 (0x8), region = 100 }
 0x322   :  { %1256 = vsyncpa [#allocation4], 1 }
 0x323   :  { %1258 = vsyncpa [#allocation4 + $0x1], 1 }
 0x324   :  { %1259 = vsyncpa [#allocation7], 1 }
 0x325   :  { %1260 = vsyncpa [#allocation10], 1 }
 0x326   :  { %1261 = vsyncpa [#allocation5], 1 }
 0x327   :  { %1263 = vsyncpa [#allocation5 + $0x1], 1 }

</bundles_post_ra>
